<compile_context>
chip_gen: v7x
topology: tpu7x:2x2x1
jax: 0.10.0
libtpu: 0.0.40
codegen_flags: <defaults>
</compile_context>

<pallas_src>
import functools
import math

import jax
import jax.numpy as jnp
from jax.experimental import pallas as pl
from jax.experimental.pallas import tpu as pltpu

_LN_EPS = 1e-5                 # PyTorch nn.LayerNorm default
_N_ATTN_GUIDED_LAYERS = 9      # spec: `if layer_idx < 9: x = layer(x, attn)`
_NEG_INF = -1e30

_WEIGHT_NAMES = ("ln1_g", "ln1_b", "wqkv", "bqkv", "wo", "bo",
                 "ln2_g", "ln2_b", "w1", "b1", "w2", "b2")


# ----------------------------------------------------------------------------
# in-kernel helpers
# ----------------------------------------------------------------------------
def _layernorm(x, g, b):
    mu = jnp.mean(x, axis=-1, keepdims=True)
    xc = x - mu
    var = jnp.mean(xc * xc, axis=-1, keepdims=True)
    return xc * jax.lax.rsqrt(var + _LN_EPS) * g + b


def _resblock_compute(layer_idx, x, pos, ctx, rel,
                      ln1_g, ln1_b, wqkv, bqkv, wo, bo,
                      ln2_g, ln2_b, w1, b1, w2, b2, *, num_heads):
    """One CLIP ResidualAttentionBlock (plus fused pre-processing) for a single
    batch element.  All arguments are values already loaded from VMEM/SMEM."""
    f32 = jnp.float32
    L, D = x.shape
    H = num_heads
    Dh = D // H
    n_ctx = ctx.shape[0]

    x = x.astype(f32)

    # ---- fused pre-processing ----------------------------------------------
    # layer 0: add the positional embedding.
    is_first = jnp.where(layer_idx == 0, 1.0, 0.0).astype(f32)
    x = x + is_first * pos.astype(f32)

    # layers > 0: overwrite tokens [1, 1 + n_ctx) with [p_uni ; p_ins].
    # Placement is a tiny selection matmul (row r picks ctx[r - 1]).
    r_i = jax.lax.broadcasted_iota(jnp.int32, (L, n_ctx), 0)
    c_i = jax.lax.broadcasted_iota(jnp.int32, (L, n_ctx), 1)
    sel = (r_i == c_i + 1).astype(f32)                          # (L, n_ctx)
    prompt_img = jnp.dot(sel, ctx.astype(f32), preferred_element_type=f32)
    apply_prompt = jnp.where(layer_idx > 0, 1.0, 0.0).astype(f32)
    mask = apply_prompt * jnp.sum(sel, axis=-1, keepdims=True)  # (L, 1) in {0,1}
    x = x * (1.0 - mask) + prompt_img * mask

    # ---- multi-head self-attention -------------------------------------------
    h = _layernorm(x, ln1_g, ln1_b)
    qkv = jnp.dot(h.astype(wqkv.dtype), wqkv, preferred_element_type=f32) + bqkv
    q = qkv[:, 0 * D:1 * D] * (1.0 / math.sqrt(Dh))
    k = qkv[:, 1 * D:2 * D]
    v = qkv[:, 2 * D:3 * D]

    def head_major(t):                       # (L, D) -> (H, L, Dh)
        return jnp.stack([t[:, hd * Dh:(hd + 1) * Dh] for hd in range(H)],
                         axis=0)

    qh = head_major(q).astype(jnp.bfloat16)
    kh = head_major(k).astype(jnp.bfloat16)
    vh = head_major(v).astype(jnp.bfloat16)

    # all-head scores in a single batched matmul
    s = jnp.einsum("hld,hmd->hlm", qh, kh, preferred_element_type=f32)  # (H,L,L)

    rows = jax.lax.broadcasted_iota(jnp.int32, (L, L), 0)
    cols = jax.lax.broadcasted_iota(jnp.int32, (L, L), 1)
    causal = jnp.where(cols <= rows, 0.0, _NEG_INF).astype(f32)
    use_rel = jnp.where(layer_idx < _N_ATTN_GUIDED_LAYERS, 1.0, 0.0).astype(f32)
    s = s + (causal + use_rel * rel.astype(f32))[None, :, :]

    s = s - jnp.max(s, axis=-1, keepdims=True)
    p = jnp.exp(s)
    p = p * pl.reciprocal(jnp.sum(p, axis=-1, keepdims=True), approx=True)

    o = jnp.einsum("hlm,hmd->hld", p.astype(jnp.bfloat16), vh,
                   preferred_element_type=f32)                   # (H, L, Dh)
    o = jnp.concatenate([o[hd] for hd in range(H)], axis=-1)     # (L, D)
    attn_out = jnp.dot(o.astype(wo.dtype), wo, preferred_element_type=f32) + bo
    x = x + attn_out

    # ---- MLP (Linear -> QuickGELU -> Linear) ---------------------------------
    h2 = _layernorm(x, ln2_g, ln2_b)
    mlp = jnp.dot(h2.astype(w1.dtype), w1, preferred_element_type=f32) + b1
    mlp = mlp * pl.reciprocal(1.0 + jnp.exp(-1.702 * mlp), approx=True)
    mlp = jnp.dot(mlp.astype(w2.dtype), w2, preferred_element_type=f32) + b2
    return x + mlp


# ----------------------------------------------------------------------------
# Pallas kernels
# ----------------------------------------------------------------------------
def resblock_kernel(idx_ref, x_ref, pos_ref, ctx_ref, rel_ref,
                    ln1_g_ref, ln1_b_ref, wqkv_ref, bqkv_ref, wo_ref, bo_ref,
                    ln2_g_ref, ln2_b_ref, w1_ref, b1_ref, w2_ref, b2_ref,
                    o_ref, *, num_heads):
    y = _resblock_compute(
        idx_ref[0], x_ref[0], pos_ref[...], ctx_ref[0], rel_ref[0],
        ln1_g_ref[...], ln1_b_ref[...], wqkv_ref[...], bqkv_ref[...],
        wo_ref[...], bo_ref[...], ln2_g_ref[...], ln2_b_ref[...],
        w1_ref[...], b1_ref[...], w2_ref[...], b2_ref[...],
        num_heads=num_heads)
    o_ref[0] = y.astype(o_ref.dtype)


def resblock_head_kernel(idx_ref, eot_ref, x_ref, pos_ref, ctx_ref, rel_ref,
                         ln1_g_ref, ln1_b_ref, wqkv_ref, bqkv_ref, wo_ref,
                         bo_ref, ln2_g_ref, ln2_b_ref, w1_ref, b1_ref, w2_ref,
                         b2_ref, lnf_g_ref, lnf_b_ref, proj_ref,
                         o_ref, head_ref, *, num_heads):
    """Last layer: resblock + fused ln_final + EOT-token gather + projection."""
    y = _resblock_compute(
        idx_ref[0], x_ref[0], pos_ref[...], ctx_ref[0], rel_ref[0],
        ln1_g_ref[...], ln1_b_ref[...], wqkv_ref[...], bqkv_ref[...],
        wo_ref[...], bo_ref[...], ln2_g_ref[...], ln2_b_ref[...],
        w1_ref[...], b1_ref[...], w2_ref[...], b2_ref[...],
        num_heads=num_heads)
    o_ref[0] = y.astype(o_ref.dtype)

    L = y.shape[0]
    eot = eot_ref[pl.program_id(0)]
    onehot = (jax.lax.broadcasted_iota(jnp.int32, (1, L), 1) == eot)
    cls = jnp.dot(onehot.astype(jnp.float32), y,
                  preferred_element_type=jnp.float32)            # (1, D)
    cls = _layernorm(cls, lnf_g_ref[...], lnf_b_ref[...])
    head_ref[0] = jnp.dot(cls.astype(proj_ref.dtype), proj_ref[...],
                          preferred_element_type=jnp.float32
                          ).astype(head_ref.dtype)


# ----------------------------------------------------------------------------
# wrappers
# ----------------------------------------------------------------------------
@functools.lru_cache(maxsize=None)
def _single_buffer_weights_supported():
    """True if this JAX/Mosaic build accepts pipeline_mode=pl.Buffered(1)
    (single-buffered constant operands); plain double-buffered fallback else."""
    def _copy(x_ref, o_ref):
        o_ref[...] = x_ref[...]
    try:
        spec = pl.BlockSpec((8, 128), lambda i: (0, 0),
                            pipeline_mode=pl.Buffered(1))
        fn = pl.pallas_call(
            _copy,
            grid=(2,),
            in_specs=[spec],
            out_specs=pl.BlockSpec((8, 128), lambda i: (0, 0)),
            out_shape=jax.ShapeDtypeStruct((8, 128), jnp.float32),
        )
        jax.block_until_ready(fn(jnp.ones((8, 128), jnp.float32)))
        return True
    except Exception:
        return False


def _vmem_limit_bytes(L, D, Dm, n_ctx, P, num_heads, w_itemsize):
    Dh = D // num_heads
    weights = ((3 * D * D + D * D + 2 * D * Dm + D * P) * w_itemsize
               + (3 * D + 8 * D + Dm) * 4)
    per_n_blocks = 2 * 4 * (2 * L * D + n_ctx * D + L * L + P)
    working = 4 * (3 * L * D + 3 * num_heads * L * Dh
                   + 2 * num_heads * L * L + L * Dm + 6 * L * D)
    est = 2 * weights + per_n_blocks + working + (8 << 20)
    return int(min(max(est, 32 << 20), 64 << 20))


@functools.lru_cache(maxsize=None)
def _build_resblock_fn(N, L, D, Dm, P, n_ctx, num_heads, with_head,
                       single_buffer, w_itemsize):
    weight_shapes = (
        (1, D), (1, D),            # ln1_g, ln1_b
        (D, 3 * D), (1, 3 * D),    # wqkv, bqkv
        (D, D), (1, D),            # wo, bo
        (1, D), (1, D),            # ln2_g, ln2_b
        (D, Dm), (1, Dm),          # w1, b1
        (Dm, D), (1, D),           # w2, b2
    )

    def const_spec(shape):
        index_map = lambda n, _r=len(shape): (0,) * _r
        if single_buffer:
            # constant operands: double-buffering buys nothing -> halve VMEM
            return pl.BlockSpec(shape, index_map, pipeline_mode=pl.Buffered(1))
        return pl.BlockSpec(shape, index_map)

    smem_spec = pl.BlockSpec(memory_space=pltpu.MemorySpace.SMEM)
    x_spec = pl.BlockSpec((1, L, D), lambda n: (n, 0, 0))
    ctx_spec = pl.BlockSpec((1, n_ctx, D), lambda n: (n, 0, 0))
    rel_spec = pl.BlockSpec((1, L, L), lambda n: (n, 0, 0))

    in_specs = [smem_spec]                                   # layer index
    if with_head:
        in_specs.append(smem_spec)                           # EOT indices
    in_specs += [x_spec, const_spec((L, D)), ctx_spec, rel_spec]
    in_specs += [const_spec(s) for s in weight_shapes]

    if with_head:
        in_specs += [const_spec((1, D)), const_spec((1, D)), const_spec((D, P))]
        out_shape = (jax.ShapeDtypeStruct((N, L, D), jnp.float32),
                     jax.ShapeDtypeStruct((N, 1, P), jnp.float32))
        out_specs = (pl.BlockSpec((1, L, D), lambda n: (n, 0, 0)),
                     pl.BlockSpec((1, 1, P), lambda n: (n, 0, 0)))
        kernel = functools.partial(resblock_head_kernel, num_heads=num_heads)
    else:
        out_shape = jax.ShapeDtypeStruct((N, L, D), jnp.float32)
        out_specs = pl.BlockSpec((1, L, D), lambda n: (n, 0, 0))
        kernel = functools.partial(resblock_kernel, num_heads=num_heads)

    call = pl.pallas_call(
        kernel,
        grid=(N,),
        in_specs=in_specs,
        out_specs=out_specs,
        out_shape=out_shape,
        compiler_params=pltpu.CompilerParams(
            dimension_semantics=("parallel",),
            vmem_limit_bytes=_vmem_limit_bytes(L, D, Dm, n_ctx, P, num_heads,
                                               w_itemsize)),
    )
    return jax.jit(call)


def run_resblock(x, layer_idx, pos, ctx, rel, lp, *, eot, head_params,
                 num_heads, single_buffer):
    N, L, D = x.shape
    Dm = lp["w1"].shape[1]
    n_ctx = ctx.shape[1]
    with_head = head_params is not None
    P = head_params[2].shape[1] if with_head else 0
    w_itemsize = jnp.dtype(lp["wqkv"].dtype).itemsize
    fn = _build_resblock_fn(N, L, D, Dm, P, n_ctx, num_heads, with_head,
                            single_buffer, w_itemsize)
    weights = [lp[k] for k in _WEIGHT_NAMES]
    if with_head:
        lnf_g, lnf_b, proj = head_params
        x_out, head = fn(layer_idx, eot, x, pos, ctx, rel, *weights,
                         lnf_g, lnf_b, proj)
        return x_out, head[:, 0, :]
    x_out = fn(layer_idx, x, pos, ctx, rel, *weights)
    return x_out, None


def prepare_instance_prompts(p_ins, n_set, flag):
    """Torch: reshape(l, c//n_set, n_set, d); if not flag:
    unsqueeze(2).expand(...).flatten(1,2).  The final permute(0,2,1,3) is only
    the seq-first relayout; we stay batch-major: (l, batch, n_set, d)."""
    l, c, d = p_ins.shape
    p = p_ins.reshape(l, c // n_set, n_set, d)
    if not flag:
        p = jnp.broadcast_to(p[:, :, None, :, :],
                             (l, c // n_set, n_set, n_set, d))
        p = p.reshape(l, c, n_set, d)
    return p


def text_encoder_forward(x, p_ins, p_uni, tokenized_prompts, attn, flag, params,
                         *, n_tpro, n_set, alpha, num_heads):
    """Pallas forward of TextEncoder.forward(x, p_ins, p_uni, tokenized_prompts,
    attn, flag)."""
    N, L, D = x.shape
    x = x.astype(jnp.float32)

    # Relation-guided re-weighting (spec's masked_fill to alpha / 1/alpha),
    # applied to layers < 9 as a softmax logit bias (== re-weight attention
    # probabilities by alpha / 1/alpha and renormalise).
    # TODO(synk): the modified CLIP resblock that consumes `attn` is not part of
    # this spec; this coupling is an assumption.
    alpha_v = 1.0 + alpha
    rel_bias = jnp.log(jnp.where(attn > 0, alpha_v, 1.0 / alpha_v)
                       ).astype(jnp.float32)

    p_ins_bm = prepare_instance_prompts(p_ins, n_set, flag).astype(jnp.float32)
    assert p_ins_bm.shape[1] == N, (p_ins_bm.shape, N)

    eot = jnp.argmax(tokenized_prompts, axis=-1).astype(jnp.int32)
    single_buffer = _single_buffer_weights_supported()

    n_ctx = n_tpro + n_set
    num_layers = len(params["layers"])
    head = None
    for i, lp in enumerate(params["layers"]):
        is_last = i == num_layers - 1
        layer_idx = jnp.array([i], jnp.int32)
        if i > 0:
            ctx = jnp.concatenate(
                [jnp.broadcast_to(p_uni[i - 1][None].astype(jnp.float32),
                                  (N, n_tpro, D)),
                 p_ins_bm[i - 1]], axis=1)
        else:
            ctx = jnp.zeros((N, n_ctx, D), jnp.float32)   # masked out in-kernel
        x, head = run_resblock(
            x, layer_idx, params["pos"], ctx, rel_bias, lp,
            eot=eot if is_last else None,
            head_params=(params["ln_f_g"], params["ln_f_b"], params["proj"])
            if is_last else None,
            num_heads=num_heads, single_buffer=single_buffer)

    out = head
    if not flag:
        out = out.reshape(out.shape[0] // n_set, n_set, -1)
    return out


# ----------------------------------------------------------------------------
# pure-JAX reference (same math, no Pallas)
# ----------------------------------------------------------------------------
def reference_forward(x, p_ins, p_uni, tokenized_prompts, attn, flag, params,
                      *, n_tpro, n_set, alpha, num_heads):
    f32 = jnp.float32

    def ln(h, g, b):
        mu = h.mean(-1, keepdims=True)
        var = ((h - mu) ** 2).mean(-1, keepdims=True)
        return (h - mu) / jnp.sqrt(var + _LN_EPS) * g + b

    N, L, D = x.shape
    H = num_heads
    Dh = D // H
    alpha_v = 1.0 + alpha
    rel = jnp.log(jnp.where(attn > 0, alpha_v, 1.0 / alpha_v)).astype(f32)
    p_ins_bm = prepare_instance_prompts(p_ins, n_set, flag).astype(f32)

    x = x.astype(f32) + params["pos"][None].astype(f32)

    rows = jnp.arange(L)[:, None]
    cols = jnp.arange(L)[None, :]
    causal = jnp.where(cols <= rows, 0.0, _NEG_INF).astype(f32)

    for i, lp in enumerate(params["layers"]):
        if i > 0:
            x = x.at[:, 1:1 + n_tpro, :].set(
                jnp.broadcast_to(p_uni[i - 1][None].astype(f32),
                                 (N, n_tpro, D)))
            x = x.at[:, 1 + n_tpro:1 + n_tpro + n_set, :].set(p_ins_bm[i - 1])
        h = ln(x, lp["ln1_g"], lp["ln1_b"])
        qkv = jnp.dot(h.astype(lp["wqkv"].dtype), lp["wqkv"],
                      preferred_element_type=f32) + lp["bqkv"]
        q, k, v = jnp.split(qkv, 3, axis=-1)
        q = q * (1.0 / math.sqrt(Dh))

        def split_heads(t):
            return t.reshape(N, L, H, Dh).transpose(0, 2, 1, 3)

        qh = split_heads(q).astype(jnp.bfloat16)
        kh = split_heads(k).astype(jnp.bfloat16)
        vh = split_heads(v).astype(jnp.bfloat16)
        s = jnp.einsum("nhld,nhmd->nhlm", qh, kh, preferred_element_type=f32)
        bias = causal[None, None, :, :]
        if i < _N_ATTN_GUIDED_LAYERS:
            bias = bias + rel[:, None, :, :]
        p = jax.nn.softmax(s + bias, axis=-1)
        o = jnp.einsum("nhlm,nhmd->nhld", p.astype(jnp.bfloat16), vh,
                       preferred_element_type=f32)
        o = o.transpose(0, 2, 1, 3).reshape(N, L, D)
        x = x + jnp.dot(o.astype(lp["wo"].dtype), lp["wo"],
                        preferred_element_type=f32) + lp["bo"]
        h2 = ln(x, lp["ln2_g"], lp["ln2_b"])
        m = jnp.dot(h2.astype(lp["w1"].dtype), lp["w1"],
                    preferred_element_type=f32) + lp["b1"]
        m = m * (1.0 / (1.0 + jnp.exp(-1.702 * m)))
        m = jnp.dot(m.astype(lp["w2"].dtype), lp["w2"],
                    preferred_element_type=f32) + lp["b2"]
        x = x + m

    eot = jnp.argmax(tokenized_prompts, axis=-1)
    cls = x[jnp.arange(N), eot]
    cls = ln(cls, params["ln_f_g"], params["ln_f_b"])
    out = jnp.dot(cls.astype(params["proj"].dtype), params["proj"],
                  preferred_element_type=f32)
    if not flag:
        out = out.reshape(out.shape[0] // n_set, n_set, -1)
    return out


# ----------------------------------------------------------------------------
# deterministic parameter construction
# ----------------------------------------------------------------------------
def make_params(key, *, num_layers, width, mlp_dim, proj_dim, seq_len,
                weight_dtype=jnp.bfloat16):
    D, Dm = width, mlp_dim

    def nrm(k, shape, scale=0.05):
        return scale * jax.random.normal(k, shape, jnp.float32)

    keys = iter(jax.random.split(key, 16 * num_layers + 16))
    params = {
        "pos": nrm(next(keys), (seq_len, D), 0.1),
        "ln_f_g": 1.0 + nrm(next(keys), (1, D), 0.1),
        "ln_f_b": nrm(next(keys), (1, D), 0.02),
        "proj": nrm(next(keys), (D, proj_dim)).astype(weight_dtype),
        "layers": [],
    }
    for _ in range(num_layers):
        params["layers"].append({
            "ln1_g": 1.0 + nrm(next(keys), (1, D), 0.1),
            "ln1_b": nrm(next(keys), (1, D), 0.02),
            "wqkv": nrm(next(keys), (D, 3 * D)).astype(weight_dtype),
            "bqkv": nrm(next(keys), (1, 3 * D), 0.02),
            "wo":   nrm(next(keys), (D, D)).astype(weight_dtype),
            "bo":   nrm(next(keys), (1, D), 0.02),
            "ln2_g": 1.0 + nrm(next(keys), (1, D), 0.1),
            "ln2_b": nrm(next(keys), (1, D), 0.02),
            "w1":   nrm(next(keys), (D, Dm)).astype(weight_dtype),
            "b1":   nrm(next(keys), (1, Dm), 0.02),
            "w2":   nrm(next(keys), (Dm, D)).astype(weight_dtype),
            "b2":   nrm(next(keys), (1, D), 0.02),
        })
    return params


# ----------------------------------------------------------------------------
if __name__ == "__main__":
    NUM_LAYERS = 12          # CLIP text depth -> exercises both sides of i < 9
    D = 32
    NUM_HEADS = 4
    MLP = 4 * D
    PROJ = 128               # lane-dense head output
    N_TPRO = 2
    N_SET = 2
    ALPHA = 0.1
    L = 16                   # 1 (SOS) + N_TPRO + N_SET + 11 suffix tokens
    BATCH = 4

    key = jax.random.PRNGKey(0)
    (k_w, k_pu, k_x1, k_pi1, k_a1, k_t1,
     k_x2, k_pi2, k_a2, k_t2) = jax.random.split(key, 10)

    params = make_params(k_w, num_layers=NUM_LAYERS, width=D, mlp_dim=MLP,
                         proj_dim=PROJ, seq_len=L)
    p_uni = 0.1 * jax.random.normal(k_pu, (NUM_LAYERS - 1, N_TPRO, D),
                                    jnp.float32)

    def run_case(flag, kx, kpi, ka, kt):
        c = BATCH * N_SET if flag else BATCH   # spec's p_ins "c" dimension
        x = jax.random.normal(kx, (BATCH, L, D), jnp.float32)
        p_ins = 0.1 * jax.random.normal(kpi, (NUM_LAYERS - 1, c, D),
                                        jnp.float32)
        attn = jax.random.normal(ka, (BATCH, L, L), jnp.float32)
        tok = jax.random.randint(kt, (BATCH, L), 0, 100)
        eot_pos = 1 + N_TPRO + N_SET + (jnp.arange(BATCH)
                                        % (L - 1 - N_TPRO - N_SET))
        tok = tok.at[jnp.arange(BATCH), eot_pos].set(1000)

        out = text_encoder_forward(x, p_ins, p_uni, tok, attn, flag, params,
                                   n_tpro=N_TPRO, n_set=N_SET, alpha=ALPHA,
                                   num_heads=NUM_HEADS)
        out = jax.block_until_ready(out)
        ref = reference_forward(x, p_ins, p_uni, tok, attn, flag, params,
                                n_tpro=N_TPRO, n_set=N_SET, alpha=ALPHA,
                                num_heads=NUM_HEADS)
        assert out.shape == ref.shape, (out.shape, ref.shape)
        err = float(jnp.max(jnp.abs(out - ref)))
        assert err < 2.5e-2, f"max |kernel - reference| = {err}"
        return out

    out_a = run_case(True, k_x1, k_pi1, k_a1, k_t1)
    assert out_a.shape == (BATCH, PROJ), out_a.shape
    out_b = run_case(False, k_x2, k_pi2, k_a2, k_t2)
    assert out_b.shape == (BATCH // N_SET, N_SET, PROJ), out_b.shape

    print("KERNEL_OK")
</pallas_src>

<mosaic_0001>
module attributes {stable_mosaic.version = 11 : i64} {
  func.func @_copy(%arg0: i32, %arg1: memref<8x128xf32, #tpu.memory_space<vmem>>, %arg2: memref<8x128xf32, #tpu.memory_space<vmem>>) attributes {dimension_semantics = [#tpu.dimension_semantics<arbitrary>], iteration_bounds = array<i64: 2>, scalar_prefetch = 0 : i64, scratch_operands = 0 : i64, tpu.core_type = #tpu.core_type<tc>, window_params = [{pipeline_mode = #tpu.pipeline_mode<synchronous>, transform_indices = @transform_0, window_bounds = array<i64: 8, 128>}, {pipeline_mode = #tpu.pipeline_mode<synchronous>, transform_indices = @transform_1, window_bounds = array<i64: 8, 128>}]} {
    %c0 = arith.constant 0 : index
    %c0_0 = arith.constant 0 : index
    %0 = vector.load %arg1[%c0, %c0_0] : memref<8x128xf32, #tpu.memory_space<vmem>>, vector<8x128xf32>
    %c0_1 = arith.constant 0 : index
    %c0_2 = arith.constant 0 : index
    %1 = vector.load %arg2[%c0_1, %c0_2] : memref<8x128xf32, #tpu.memory_space<vmem>>, vector<8x128xf32>
    tpu.vector_store %arg2[%c0_1, %c0_2], %0 {strides = array<i32>} : memref<8x128xf32, #tpu.memory_space<vmem>>, vector<8x128xf32>,
    return
  }
  func.func @transform_0(%arg0: i32) -> (i32, i32) {
    %c0_i32 = arith.constant 0 : i32
    %c0_i32_0 = arith.constant 0 : i32
    %c0_i32_1 = arith.constant 0 : i32
    return %c0_i32, %c0_i32_0 : i32, i32
  }
  func.func @transform_1(%arg0: i32) -> (i32, i32) {
    %c0_i32 = arith.constant 0 : i32
    %c0_i32_0 = arith.constant 0 : i32
    %c0_i32_1 = arith.constant 0 : i32
    return %c0_i32, %c0_i32_0 : i32, i32
  }
}

module attributes {stable_mosaic.version = 11 : i64} {
  func.func @resblock_kernel(%arg0: i32, %arg1: memref<1xi32, #tpu.memory_space<smem>>, %arg2: memref<1x16x32xf32, #tpu.memory_space<vmem>>, %arg3: memref<16x32xf32, #tpu.memory_space<vmem>>, %arg4: memref<1x4x32xf32, #tpu.memory_space<vmem>>, %arg5: memref<1x16x16xf32, #tpu.memory_space<vmem>>, %arg6: memref<1x32xf32, #tpu.memory_space<vmem>>, %arg7: memref<1x32xf32, #tpu.memory_space<vmem>>, %arg8: memref<32x96xbf16, #tpu.memory_space<vmem>>, %arg9: memref<1x96xf32, #tpu.memory_space<vmem>>, %arg10: memref<32x32xbf16, #tpu.memory_space<vmem>>, %arg11: memref<1x32xf32, #tpu.memory_space<vmem>>, %arg12: memref<1x32xf32, #tpu.memory_space<vmem>>, %arg13: memref<1x32xf32, #tpu.memory_space<vmem>>, %arg14: memref<32x128xbf16, #tpu.memory_space<vmem>>, %arg15: memref<1x128xf32, #tpu.memory_space<vmem>>, %arg16: memref<128x32xbf16, #tpu.memory_space<vmem>>, %arg17: memref<1x32xf32, #tpu.memory_space<vmem>>, %arg18: memref<1x16x32xf32, #tpu.memory_space<vmem>>) attributes {dimension_semantics = [#tpu.dimension_semantics<parallel>], iteration_bounds = array<i64: 4>, scalar_prefetch = 0 : i64, scratch_operands = 0 : i64, tpu.core_type = #tpu.core_type<tc>, window_params = [{transform_indices = @transform_0, window_bounds = array<i64: 1>}, {transform_indices = @transform_1, window_bounds = array<i64: 1, 16, 32>}, {pipeline_mode = #tpu.pipeline_mode<synchronous>, transform_indices = @transform_2, window_bounds = array<i64: 16, 32>}, {transform_indices = @transform_3, window_bounds = array<i64: 1, 4, 32>}, {transform_indices = @transform_4, window_bounds = array<i64: 1, 16, 16>}, {pipeline_mode = #tpu.pipeline_mode<synchronous>, transform_indices = @transform_5, window_bounds = array<i64: 1, 32>}, {pipeline_mode = #tpu.pipeline_mode<synchronous>, transform_indices = @transform_6, window_bounds = array<i64: 1, 32>}, {pipeline_mode = #tpu.pipeline_mode<synchronous>, transform_indices = @transform_7, window_bounds = array<i64: 32, 96>}, {pipeline_mode = #tpu.pipeline_mode<synchronous>, transform_indices = @transform_8, window_bounds = array<i64: 1, 96>}, {pipeline_mode = #tpu.pipeline_mode<synchronous>, transform_indices = @transform_9, window_bounds = array<i64: 32, 32>}, {pipeline_mode = #tpu.pipeline_mode<synchronous>, transform_indices = @transform_10, window_bounds = array<i64: 1, 32>}, {pipeline_mode = #tpu.pipeline_mode<synchronous>, transform_indices = @transform_11, window_bounds = array<i64: 1, 32>}, {pipeline_mode = #tpu.pipeline_mode<synchronous>, transform_indices = @transform_12, window_bounds = array<i64: 1, 32>}, {pipeline_mode = #tpu.pipeline_mode<synchronous>, transform_indices = @transform_13, window_bounds = array<i64: 32, 128>}, {pipeline_mode = #tpu.pipeline_mode<synchronous>, transform_indices = @transform_14, window_bounds = array<i64: 1, 128>}, {pipeline_mode = #tpu.pipeline_mode<synchronous>, transform_indices = @transform_15, window_bounds = array<i64: 128, 32>}, {pipeline_mode = #tpu.pipeline_mode<synchronous>, transform_indices = @transform_16, window_bounds = array<i64: 1, 32>}, {transform_indices = @transform_17, window_bounds = array<i64: 1, 16, 32>}]} {
    %c0 = arith.constant 0 : index
    %0 = memref.load %arg1[%c0] : memref<1xi32, #tpu.memory_space<smem>>
    %c0_0 = arith.constant 0 : index
    %c0_1 = arith.constant 0 : index
    %c0_2 = arith.constant 0 : index
    %1 = vector.load %arg2[%c0_0, %c0_1, %c0_2] : memref<1x16x32xf32, #tpu.memory_space<vmem>>, vector<1x16x32xf32>
    %2 = vector.shape_cast %1 : vector<1x16x32xf32> to vector<16x32xf32>
    %c0_3 = arith.constant 0 : index
    %c0_4 = arith.constant 0 : index
    %3 = vector.load %arg3[%c0_3, %c0_4] : memref<16x32xf32, #tpu.memory_space<vmem>>, vector<16x32xf32>
    %c0_5 = arith.constant 0 : index
    %c0_6 = arith.constant 0 : index
    %c0_7 = arith.constant 0 : index
    %4 = vector.load %arg4[%c0_5, %c0_6, %c0_7] : memref<1x4x32xf32, #tpu.memory_space<vmem>>, vector<1x4x32xf32>
    %5 = vector.shape_cast %4 : vector<1x4x32xf32> to vector<4x32xf32>
    %c0_8 = arith.constant 0 : index
    %c0_9 = arith.constant 0 : index
    %c0_10 = arith.constant 0 : index
    %6 = vector.load %arg5[%c0_8, %c0_9, %c0_10] : memref<1x16x16xf32, #tpu.memory_space<vmem>>, vector<1x16x16xf32>
    %7 = vector.shape_cast %6 : vector<1x16x16xf32> to vector<16x16xf32>
    %c0_11 = arith.constant 0 : index
    %c0_12 = arith.constant 0 : index
    %8 = vector.load %arg6[%c0_11, %c0_12] : memref<1x32xf32, #tpu.memory_space<vmem>>, vector<1x32xf32>
    %c0_13 = arith.constant 0 : index
    %c0_14 = arith.constant 0 : index
    %9 = vector.load %arg7[%c0_13, %c0_14] : memref<1x32xf32, #tpu.memory_space<vmem>>, vector<1x32xf32>
    %c0_15 = arith.constant 0 : index
    %c0_16 = arith.constant 0 : index
    %10 = vector.load %arg8[%c0_15, %c0_16] : memref<32x96xbf16, #tpu.memory_space<vmem>>, vector<32x96xbf16>
    %c0_17 = arith.constant 0 : index
    %c0_18 = arith.constant 0 : index
    %11 = vector.load %arg9[%c0_17, %c0_18] : memref<1x96xf32, #tpu.memory_space<vmem>>, vector<1x96xf32>
    %c0_19 = arith.constant 0 : index
    %c0_20 = arith.constant 0 : index
    %12 = vector.load %arg10[%c0_19, %c0_20] : memref<32x32xbf16, #tpu.memory_space<vmem>>, vector<32x32xbf16>
    %c0_21 = arith.constant 0 : index
    %c0_22 = arith.constant 0 : index
    %13 = vector.load %arg11[%c0_21, %c0_22] : memref<1x32xf32, #tpu.memory_space<vmem>>, vector<1x32xf32>
    %c0_23 = arith.constant 0 : index
    %c0_24 = arith.constant 0 : index
    %14 = vector.load %arg12[%c0_23, %c0_24] : memref<1x32xf32, #tpu.memory_space<vmem>>, vector<1x32xf32>
    %c0_25 = arith.constant 0 : index
    %c0_26 = arith.constant 0 : index
    %15 = vector.load %arg13[%c0_25, %c0_26] : memref<1x32xf32, #tpu.memory_space<vmem>>, vector<1x32xf32>
    %c0_27 = arith.constant 0 : index
    %c0_28 = arith.constant 0 : index
    %16 = vector.load %arg14[%c0_27, %c0_28] : memref<32x128xbf16, #tpu.memory_space<vmem>>, vector<32x128xbf16>
    %c0_29 = arith.constant 0 : index
    %c0_30 = arith.constant 0 : index
    %17 = vector.load %arg15[%c0_29, %c0_30] : memref<1x128xf32, #tpu.memory_space<vmem>>, vector<1x128xf32>
    %c0_31 = arith.constant 0 : index
    %c0_32 = arith.constant 0 : index
    %18 = vector.load %arg16[%c0_31, %c0_32] : memref<128x32xbf16, #tpu.memory_space<vmem>>, vector<128x32xbf16>
    %c0_33 = arith.constant 0 : index
    %c0_34 = arith.constant 0 : index
    %19 = vector.load %arg17[%c0_33, %c0_34] : memref<1x32xf32, #tpu.memory_space<vmem>>, vector<1x32xf32>
    %c0_i32 = arith.constant 0 : i32
    %20 = arith.cmpi eq, %0, %c0_i32 : i32
    %cst = arith.constant 1.000000e+00 : f32
    %cst_35 = arith.constant 0.000000e+00 : f32
    %21 = arith.select %20, %cst, %cst_35 : f32
    %22 = vector.broadcast %21 : f32 to vector<16x32xf32>
    %23 = arith.mulf %22, %3 : vector<16x32xf32>
    %24 = arith.addf %2, %23 : vector<16x32xf32>
    %25 = tpu.iota {dimensions = array<i32: 0>} : vector<16x4xi32>
    %26 = tpu.iota {dimensions = array<i32: 1>} : vector<16x4xi32>
    %c1_i32 = arith.constant 1 : i32
    %27 = vector.broadcast %c1_i32 : i32 to vector<16x4xi32>
    %28 = arith.addi %26, %27 : vector<16x4xi32>
    %29 = arith.cmpi eq, %25, %28 : vector<16x4xi32>
    %30 = arith.extui %29 : vector<16x4xi1> to vector<16x4xi32>
    %31 = arith.sitofp %30 : vector<16x4xi32> to vector<16x4xf32>
    %cst_36 = arith.constant dense<0.000000e+00> : vector<16x32xf32>
    %32 = tpu.matmul %31, %5, %cst_36 {dimension_numbers = #tpu.dot_dimension_numbers<[1], [0], [0], [1], [0, 0, 1, 1], [], []>} : vector<16x4xf32>, vector<4x32xf32>, vector<16x32xf32> -> vector<16x32xf32>
    %c0_i32_37 = arith.constant 0 : i32
    %33 = arith.cmpi sgt, %0, %c0_i32_37 : i32
    %cst_38 = arith.constant 1.000000e+00 : f32
    %cst_39 = arith.constant 0.000000e+00 : f32
    %34 = arith.select %33, %cst_38, %cst_39 : f32
    %cst_40 = arith.constant dense<0.000000e+00> : vector<16xf32>
    %35 = vector.multi_reduction <add>, %31, %cst_40 [1] : vector<16x4xf32> to vector<16xf32>
    %36 = vector.shape_cast %35 : vector<16xf32> to vector<16x1xf32>
    %37 = vector.broadcast %34 : f32 to vector<16x1xf32>
    %38 = arith.mulf %37, %36 : vector<16x1xf32>
    %cst_41 = arith.constant 1.000000e+00 : f32
    %39 = vector.broadcast %cst_41 : f32 to vector<16x1xf32>
    %40 = arith.subf %39, %38 : vector<16x1xf32>
    %41 = vector.broadcast %40 : vector<16x1xf32> to vector<16x32xf32>
    %42 = arith.mulf %24, %41 : vector<16x32xf32>
    %43 = vector.broadcast %38 : vector<16x1xf32> to vector<16x32xf32>
    %44 = arith.mulf %32, %43 : vector<16x32xf32>
    %45 = arith.addf %42, %44 : vector<16x32xf32>
    %cst_42 = arith.constant dense<0.000000e+00> : vector<16xf32>
    %46 = vector.multi_reduction <add>, %45, %cst_42 [1] : vector<16x32xf32> to vector<16xf32>
    %47 = vector.shape_cast %46 : vector<16xf32> to vector<16x1xf32>
    %cst_43 = arith.constant 3.200000e+01 : f32
    %48 = vector.broadcast %cst_43 : f32 to vector<16x1xf32>
    %49 = arith.divf %47, %48 : vector<16x1xf32>
    %50 = vector.broadcast %49 : vector<16x1xf32> to vector<16x32xf32>
    %51 = arith.subf %45, %50 : vector<16x32xf32>
    %52 = arith.mulf %51, %51 : vector<16x32xf32>
    %cst_44 = arith.constant dense<0.000000e+00> : vector<16xf32>
    %53 = vector.multi_reduction <add>, %52, %cst_44 [1] : vector<16x32xf32> to vector<16xf32>
    %54 = vector.shape_cast %53 : vector<16xf32> to vector<16x1xf32>
    %cst_45 = arith.constant 3.200000e+01 : f32
    %55 = vector.broadcast %cst_45 : f32 to vector<16x1xf32>
    %56 = arith.divf %54, %55 : vector<16x1xf32>
    %cst_46 = arith.constant 9.99999974E-6 : f32
    %57 = vector.broadcast %cst_46 : f32 to vector<16x1xf32>
    %58 = arith.addf %56, %57 : vector<16x1xf32>
    %59 = math.rsqrt %58 : vector<16x1xf32>
    %60 = vector.broadcast %59 : vector<16x1xf32> to vector<16x32xf32>
    %61 = arith.mulf %51, %60 : vector<16x32xf32>
    %62 = vector.broadcast %8 : vector<1x32xf32> to vector<16x32xf32>
    %63 = arith.mulf %61, %62 : vector<16x32xf32>
    %64 = vector.broadcast %9 : vector<1x32xf32> to vector<16x32xf32>
    %65 = arith.addf %63, %64 : vector<16x32xf32>
    %66 = arith.truncf %65 : vector<16x32xf32> to vector<16x32xbf16>
    %cst_47 = arith.constant dense<0.000000e+00> : vector<16x96xf32>
    %67 = tpu.matmul %66, %10, %cst_47 {dimension_numbers = #tpu.dot_dimension_numbers<[1], [0], [0], [1], [0, 0, 1, 1], [], []>} : vector<16x32xbf16>, vector<32x96xbf16>, vector<16x96xf32> -> vector<16x96xf32>
    %68 = vector.broadcast %11 : vector<1x96xf32> to vector<16x96xf32>
    %69 = arith.addf %67, %68 : vector<16x96xf32>
    %70 = vector.extract_strided_slice %69 {offsets = [0, 0], sizes = [16, 32], strides = [1, 1]} : vector<16x96xf32> to vector<16x32xf32>
    %cst_48 = arith.constant 0.353553385 : f32
    %71 = vector.broadcast %cst_48 : f32 to vector<16x32xf32>
    %72 = arith.mulf %70, %71 : vector<16x32xf32>
    %73 = vector.extract_strided_slice %69 {offsets = [0, 32], sizes = [16, 32], strides = [1, 1]} : vector<16x96xf32> to vector<16x32xf32>
    %74 = vector.extract_strided_slice %69 {offsets = [0, 64], sizes = [16, 32], strides = [1, 1]} : vector<16x96xf32> to vector<16x32xf32>
    %75 = vector.extract_strided_slice %72 {offsets = [0, 0], sizes = [16, 8], strides = [1, 1]} : vector<16x32xf32> to vector<16x8xf32>
    %76 = vector.extract_strided_slice %72 {offsets = [0, 8], sizes = [16, 8], strides = [1, 1]} : vector<16x32xf32> to vector<16x8xf32>
    %77 = vector.extract_strided_slice %72 {offsets = [0, 16], sizes = [16, 8], strides = [1, 1]} : vector<16x32xf32> to vector<16x8xf32>
    %78 = vector.extract_strided_slice %72 {offsets = [0, 24], sizes = [16, 8], strides = [1, 1]} : vector<16x32xf32> to vector<16x8xf32>
    %79 = vector.shape_cast %75 : vector<16x8xf32> to vector<1x16x8xf32>
    %80 = vector.shape_cast %76 : vector<16x8xf32> to vector<1x16x8xf32>
    %81 = vector.shape_cast %77 : vector<16x8xf32> to vector<1x16x8xf32>
    %82 = vector.shape_cast %78 : vector<16x8xf32> to vector<1x16x8xf32>
    %83 = tpu.concatenate %79, %80, %81, %82 in 0 : vector<1x16x8xf32>, vector<1x16x8xf32>, vector<1x16x8xf32>, vector<1x16x8xf32> -> vector<4x16x8xf32>
    %84 = arith.truncf %83 : vector<4x16x8xf32> to vector<4x16x8xbf16>
    %85 = vector.extract_strided_slice %73 {offsets = [0, 0], sizes = [16, 8], strides = [1, 1]} : vector<16x32xf32> to vector<16x8xf32>
    %86 = vector.extract_strided_slice %73 {offsets = [0, 8], sizes = [16, 8], strides = [1, 1]} : vector<16x32xf32> to vector<16x8xf32>
    %87 = vector.extract_strided_slice %73 {offsets = [0, 16], sizes = [16, 8], strides = [1, 1]} : vector<16x32xf32> to vector<16x8xf32>
    %88 = vector.extract_strided_slice %73 {offsets = [0, 24], sizes = [16, 8], strides = [1, 1]} : vector<16x32xf32> to vector<16x8xf32>
    %89 = vector.shape_cast %85 : vector<16x8xf32> to vector<1x16x8xf32>
    %90 = vector.shape_cast %86 : vector<16x8xf32> to vector<1x16x8xf32>
    %91 = vector.shape_cast %87 : vector<16x8xf32> to vector<1x16x8xf32>
    %92 = vector.shape_cast %88 : vector<16x8xf32> to vector<1x16x8xf32>
    %93 = tpu.concatenate %89, %90, %91, %92 in 0 : vector<1x16x8xf32>, vector<1x16x8xf32>, vector<1x16x8xf32>, vector<1x16x8xf32> -> vector<4x16x8xf32>
    %94 = arith.truncf %93 : vector<4x16x8xf32> to vector<4x16x8xbf16>
    %95 = vector.extract_strided_slice %74 {offsets = [0, 0], sizes = [16, 8], strides = [1, 1]} : vector<16x32xf32> to vector<16x8xf32>
    %96 = vector.extract_strided_slice %74 {offsets = [0, 8], sizes = [16, 8], strides = [1, 1]} : vector<16x32xf32> to vector<16x8xf32>
    %97 = vector.extract_strided_slice %74 {offsets = [0, 16], sizes = [16, 8], strides = [1, 1]} : vector<16x32xf32> to vector<16x8xf32>
    %98 = vector.extract_strided_slice %74 {offsets = [0, 24], sizes = [16, 8], strides = [1, 1]} : vector<16x32xf32> to vector<16x8xf32>
    %99 = vector.shape_cast %95 : vector<16x8xf32> to vector<1x16x8xf32>
    %100 = vector.shape_cast %96 : vector<16x8xf32> to vector<1x16x8xf32>
    %101 = vector.shape_cast %97 : vector<16x8xf32> to vector<1x16x8xf32>
    %102 = vector.shape_cast %98 : vector<16x8xf32> to vector<1x16x8xf32>
    %103 = tpu.concatenate %99, %100, %101, %102 in 0 : vector<1x16x8xf32>, vector<1x16x8xf32>, vector<1x16x8xf32>, vector<1x16x8xf32> -> vector<4x16x8xf32>
    %104 = arith.truncf %103 : vector<4x16x8xf32> to vector<4x16x8xbf16>
    "tpu.trace_start"() <{level = 10 : i32, message = "hld,hmd->hlm"}> : () -> ()
    %cst_49 = arith.constant dense<0.000000e+00> : vector<4x16x16xf32>
    %105 = tpu.matmul %84, %94, %cst_49 {dimension_numbers = #tpu.dot_dimension_numbers<[2], [2], [1], [1], [0, 0, 0, 1, 1, 1], [0], [0]>} : vector<4x16x8xbf16>, vector<4x16x8xbf16>, vector<4x16x16xf32> -> vector<4x16x16xf32>
    "tpu.trace_stop"() : () -> ()
    %106 = tpu.iota {dimensions = array<i32: 0>} : vector<16x16xi32>
    %107 = tpu.iota {dimensions = array<i32: 1>} : vector<16x16xi32>
    %108 = arith.cmpi sle, %107, %106 : vector<16x16xi32>
    %cst_50 = arith.constant 0.000000e+00 : f32
    %cst_51 = arith.constant -1.000000e+30 : f32
    %109 = vector.broadcast %cst_50 : f32 to vector<16x16xf32>
    %110 = vector.broadcast %cst_51 : f32 to vector<16x16xf32>
    %111 = arith.select %108, %109, %110 : vector<16x16xi1>, vector<16x16xf32>
    %c9_i32 = arith.constant 9 : i32
    %112 = arith.cmpi slt, %0, %c9_i32 : i32
    %cst_52 = arith.constant 1.000000e+00 : f32
    %cst_53 = arith.constant 0.000000e+00 : f32
    %113 = arith.select %112, %cst_52, %cst_53 : f32
    %114 = vector.broadcast %113 : f32 to vector<16x16xf32>
    %115 = arith.mulf %114, %7 : vector<16x16xf32>
    %116 = arith.addf %111, %115 : vector<16x16xf32>
    %117 = vector.shape_cast %116 : vector<16x16xf32> to vector<1x16x16xf32>
    %118 = vector.broadcast %117 : vector<1x16x16xf32> to vector<4x16x16xf32>
    %119 = arith.addf %105, %118 : vector<4x16x16xf32>
    %cst_54 = arith.constant dense<0xFF800000> : vector<4x16xf32>
    %120 = vector.multi_reduction <maximumf>, %119, %cst_54 [2] : vector<4x16x16xf32> to vector<4x16xf32>
    %121 = vector.shape_cast %120 : vector<4x16xf32> to vector<4x16x1xf32>
    %122 = vector.broadcast %121 : vector<4x16x1xf32> to vector<4x16x16xf32>
    %123 = arith.subf %119, %122 : vector<4x16x16xf32>
    %124 = math.exp %123 : vector<4x16x16xf32>
    %cst_55 = arith.constant dense<0.000000e+00> : vector<4x16xf32>
    %125 = vector.multi_reduction <add>, %124, %cst_55 [2] : vector<4x16x16xf32> to vector<4x16xf32>
    %126 = vector.shape_cast %125 : vector<4x16xf32> to vector<4x16x1xf32>
    %127 = tpu.reciprocal %126 {approx = true} : vector<4x16x1xf32> -> vector<4x16x1xf32>
    %128 = vector.broadcast %127 : vector<4x16x1xf32> to vector<4x16x16xf32>
    %129 = arith.mulf %124, %128 : vector<4x16x16xf32>
    %130 = arith.truncf %129 : vector<4x16x16xf32> to vector<4x16x16xbf16>
    "tpu.trace_start"() <{level = 10 : i32, message = "hlm,hmd->hld"}> : () -> ()
    %cst_56 = arith.constant dense<0.000000e+00> : vector<4x16x8xf32>
    %131 = tpu.matmul %130, %104, %cst_56 {dimension_numbers = #tpu.dot_dimension_numbers<[2], [1], [1], [2], [0, 0, 0, 1, 1, 2], [0], [0]>} : vector<4x16x16xbf16>, vector<4x16x8xbf16>, vector<4x16x8xf32> -> vector<4x16x8xf32>
    "tpu.trace_stop"() : () -> ()
    %132 = vector.extract_strided_slice %131 {offsets = [0, 0, 0], sizes = [1, 16, 8], strides = [1, 1, 1]} : vector<4x16x8xf32> to vector<1x16x8xf32>
    %133 = vector.shape_cast %132 : vector<1x16x8xf32> to vector<16x8xf32>
    %134 = vector.extract_strided_slice %131 {offsets = [1, 0, 0], sizes = [1, 16, 8], strides = [1, 1, 1]} : vector<4x16x8xf32> to vector<1x16x8xf32>
    %135 = vector.shape_cast %134 : vector<1x16x8xf32> to vector<16x8xf32>
    %136 = vector.extract_strided_slice %131 {offsets = [2, 0, 0], sizes = [1, 16, 8], strides = [1, 1, 1]} : vector<4x16x8xf32> to vector<1x16x8xf32>
    %137 = vector.shape_cast %136 : vector<1x16x8xf32> to vector<16x8xf32>
    %138 = vector.extract_strided_slice %131 {offsets = [3, 0, 0], sizes = [1, 16, 8], strides = [1, 1, 1]} : vector<4x16x8xf32> to vector<1x16x8xf32>
    %139 = vector.shape_cast %138 : vector<1x16x8xf32> to vector<16x8xf32>
    %140 = tpu.concatenate %133, %135, %137, %139 in 1 : vector<16x8xf32>, vector<16x8xf32>, vector<16x8xf32>, vector<16x8xf32> -> vector<16x32xf32>
    %141 = arith.truncf %140 : vector<16x32xf32> to vector<16x32xbf16>
    %cst_57 = arith.constant dense<0.000000e+00> : vector<16x32xf32>
    %142 = tpu.matmul %141, %12, %cst_57 {dimension_numbers = #tpu.dot_dimension_numbers<[1], [0], [0], [1], [0, 0, 1, 1], [], []>} : vector<16x32xbf16>, vector<32x32xbf16>, vector<16x32xf32> -> vector<16x32xf32>
    %143 = vector.broadcast %13 : vector<1x32xf32> to vector<16x32xf32>
    %144 = arith.addf %142, %143 : vector<16x32xf32>
    %145 = arith.addf %45, %144 : vector<16x32xf32>
    %cst_58 = arith.constant dense<0.000000e+00> : vector<16xf32>
    %146 = vector.multi_reduction <add>, %145, %cst_58 [1] : vector<16x32xf32> to vector<16xf32>
    %147 = vector.shape_cast %146 : vector<16xf32> to vector<16x1xf32>
    %cst_59 = arith.constant 3.200000e+01 : f32
    %148 = vector.broadcast %cst_59 : f32 to vector<16x1xf32>
    %149 = arith.divf %147, %148 : vector<16x1xf32>
    %150 = vector.broadcast %149 : vector<16x1xf32> to vector<16x32xf32>
    %151 = arith.subf %145, %150 : vector<16x32xf32>
    %152 = arith.mulf %151, %151 : vector<16x32xf32>
    %cst_60 = arith.constant dense<0.000000e+00> : vector<16xf32>
    %153 = vector.multi_reduction <add>, %152, %cst_60 [1] : vector<16x32xf32> to vector<16xf32>
    %154 = vector.shape_cast %153 : vector<16xf32> to vector<16x1xf32>
    %cst_61 = arith.constant 3.200000e+01 : f32
    %155 = vector.broadcast %cst_61 : f32 to vector<16x1xf32>
    %156 = arith.divf %154, %155 : vector<16x1xf32>
    %cst_62 = arith.constant 9.99999974E-6 : f32
    %157 = vector.broadcast %cst_62 : f32 to vector<16x1xf32>
    %158 = arith.addf %156, %157 : vector<16x1xf32>
    %159 = math.rsqrt %158 : vector<16x1xf32>
    %160 = vector.broadcast %159 : vector<16x1xf32> to vector<16x32xf32>
    %161 = arith.mulf %151, %160 : vector<16x32xf32>
    %162 = vector.broadcast %14 : vector<1x32xf32> to vector<16x32xf32>
    %163 = arith.mulf %161, %162 : vector<16x32xf32>
    %164 = vector.broadcast %15 : vector<1x32xf32> to vector<16x32xf32>
    %165 = arith.addf %163, %164 : vector<16x32xf32>
    %166 = arith.truncf %165 : vector<16x32xf32> to vector<16x32xbf16>
    %cst_63 = arith.constant dense<0.000000e+00> : vector<16x128xf32>
    %167 = tpu.matmul %166, %16, %cst_63 {dimension_numbers = #tpu.dot_dimension_numbers<[1], [0], [0], [1], [0, 0, 1, 1], [], []>} : vector<16x32xbf16>, vector<32x128xbf16>, vector<16x128xf32> -> vector<16x128xf32>
    %168 = vector.broadcast %17 : vector<1x128xf32> to vector<16x128xf32>
    %169 = arith.addf %167, %168 : vector<16x128xf32>
    %cst_64 = arith.constant -1.702000e+00 : f32
    %170 = vector.broadcast %cst_64 : f32 to vector<16x128xf32>
    %171 = arith.mulf %170, %169 : vector<16x128xf32>
    %172 = math.exp %171 : vector<16x128xf32>
    %cst_65 = arith.constant 1.000000e+00 : f32
    %173 = vector.broadcast %cst_65 : f32 to vector<16x128xf32>
    %174 = arith.addf %173, %172 : vector<16x128xf32>
    %175 = tpu.reciprocal %174 {approx = true} : vector<16x128xf32> -> vector<16x128xf32>
    %176 = arith.mulf %169, %175 : vector<16x128xf32>
    %177 = arith.truncf %176 : vector<16x128xf32> to vector<16x128xbf16>
    %cst_66 = arith.constant dense<0.000000e+00> : vector<16x32xf32>
    %178 = tpu.matmul %177, %18, %cst_66 {dimension_numbers = #tpu.dot_dimension_numbers<[1], [0], [0], [1], [0, 0, 1, 1], [], []>} : vector<16x128xbf16>, vector<128x32xbf16>, vector<16x32xf32> -> vector<16x32xf32>
    %179 = vector.broadcast %19 : vector<1x32xf32> to vector<16x32xf32>
    %180 = arith.addf %178, %179 : vector<16x32xf32>
    %181 = arith.addf %145, %180 : vector<16x32xf32>
    %c0_67 = arith.constant 0 : index
    %c0_68 = arith.constant 0 : index
    %c0_69 = arith.constant 0 : index
    %182 = vector.load %arg18[%c0_67, %c0_68, %c0_69] : memref<1x16x32xf32, #tpu.memory_space<vmem>>, vector<1x16x32xf32>
    %183 = vector.shape_cast %182 : vector<1x16x32xf32> to vector<16x32xf32>
    %184 = vector.shape_cast %181 : vector<16x32xf32> to vector<1x16x32xf32>
    tpu.vector_store %arg18[%c0_67, %c0_68, %c0_69], %184 {strides = array<i32>} : memref<1x16x32xf32, #tpu.memory_space<vmem>>, vector<1x16x32xf32>,
    return
  }
  func.func @transform_0(%arg0: i32) -> i32 {
    %c0_i32 = arith.constant 0 : i32
    %c0_i32_0 = arith.constant 0 : i32
    return %c0_i32 : i32
  }
  func.func @transform_1(%arg0: i32) -> (i32, i32, i32) {
    %c0_i32 = arith.constant 0 : i32
    %c0_i32_0 = arith.constant 0 : i32
    %c0_i32_1 = arith.constant 0 : i32
    return %arg0, %c0_i32, %c0_i32_0 : i32, i32, i32
  }
  func.func @transform_2(%arg0: i32) -> (i32, i32) {
    %c0_i32 = arith.constant 0 : i32
    %c0_i32_0 = arith.constant 0 : i32
    %c0_i32_1 = arith.constant 0 : i32
    return %c0_i32, %c0_i32_0 : i32, i32
  }
  func.func @transform_3(%arg0: i32) -> (i32, i32, i32) {
    %c0_i32 = arith.constant 0 : i32
    %c0_i32_0 = arith.constant 0 : i32
    %c0_i32_1 = arith.constant 0 : i32
    return %arg0, %c0_i32, %c0_i32_0 : i32, i32, i32
  }
  func.func @transform_4(%arg0: i32) -> (i32, i32, i32) {
    %c0_i32 = arith.constant 0 : i32
    %c0_i32_0 = arith.constant 0 : i32
    %c0_i32_1 = arith.constant 0 : i32
    return %arg0, %c0_i32, %c0_i32_0 : i32, i32, i32
  }
  func.func @transform_5(%arg0: i32) -> (i32, i32) {
    %c0_i32 = arith.constant 0 : i32
    %c0_i32_0 = arith.constant 0 : i32
    %c0_i32_1 = arith.constant 0 : i32
    return %c0_i32, %c0_i32_0 : i32, i32
  }
  func.func @transform_6(%arg0: i32) -> (i32, i32) {
    %c0_i32 = arith.constant 0 : i32
    %c0_i32_0 = arith.constant 0 : i32
    %c0_i32_1 = arith.constant 0 : i32
    return %c0_i32, %c0_i32_0 : i32, i32
  }
  func.func @transform_7(%arg0: i32) -> (i32, i32) {
    %c0_i32 = arith.constant 0 : i32
    %c0_i32_0 = arith.constant 0 : i32
    %c0_i32_1 = arith.constant 0 : i32
    return %c0_i32, %c0_i32_0 : i32, i32
  }
  func.func @transform_8(%arg0: i32) -> (i32, i32) {
    %c0_i32 = arith.constant 0 : i32
    %c0_i32_0 = arith.constant 0 : i32
    %c0_i32_1 = arith.constant 0 : i32
    return %c0_i32, %c0_i32_0 : i32, i32
  }
  func.func @transform_9(%arg0: i32) -> (i32, i32) {
    %c0_i32 = arith.constant 0 : i32
    %c0_i32_0 = arith.constant 0 : i32
    %c0_i32_1 = arith.constant 0 : i32
    return %c0_i32, %c0_i32_0 : i32, i32
  }
  func.func @transform_10(%arg0: i32) -> (i32, i32) {
    %c0_i32 = arith.constant 0 : i32
    %c0_i32_0 = arith.constant 0 : i32
    %c0_i32_1 = arith.constant 0 : i32
    return %c0_i32, %c0_i32_0 : i32, i32
  }
  func.func @transform_11(%arg0: i32) -> (i32, i32) {
    %c0_i32 = arith.constant 0 : i32
    %c0_i32_0 = arith.constant 0 : i32
    %c0_i32_1 = arith.constant 0 : i32
    return %c0_i32, %c0_i32_0 : i32, i32
  }
  func.func @transform_12(%arg0: i32) -> (i32, i32) {
    %c0_i32 = arith.constant 0 : i32
    %c0_i32_0 = arith.constant 0 : i32
    %c0_i32_1 = arith.constant 0 : i32
    return %c0_i32, %c0_i32_0 : i32, i32
  }
  func.func @transform_13(%arg0: i32) -> (i32, i32) {
    %c0_i32 = arith.constant 0 : i32
    %c0_i32_0 = arith.constant 0 : i32
    %c0_i32_1 = arith.constant 0 : i32
    return %c0_i32, %c0_i32_0 : i32, i32
  }
  func.func @transform_14(%arg0: i32) -> (i32, i32) {
    %c0_i32 = arith.constant 0 : i32
    %c0_i32_0 = arith.constant 0 : i32
    %c0_i32_1 = arith.constant 0 : i32
    return %c0_i32, %c0_i32_0 : i32, i32
  }
  func.func @transform_15(%arg0: i32) -> (i32, i32) {
    %c0_i32 = arith.constant 0 : i32
    %c0_i32_0 = arith.constant 0 : i32
    %c0_i32_1 = arith.constant 0 : i32
    return %c0_i32, %c0_i32_0 : i32, i32
  }
  func.func @transform_16(%arg0: i32) -> (i32, i32) {
    %c0_i32 = arith.constant 0 : i32
    %c0_i32_0 = arith.constant 0 : i32
    %c0_i32_1 = arith.constant 0 : i32
    return %c0_i32, %c0_i32_0 : i32, i32
  }
  func.func @transform_17(%arg0: i32) -> (i32, i32, i32) {
    %c0_i32 = arith.constant 0 : i32
    %c0_i32_0 = arith.constant 0 : i32
    %c0_i32_1 = arith.constant 0 : i32
    return %arg0, %c0_i32, %c0_i32_0 : i32, i32, i32
  }
}

</mosaic_0001>

<bundles_post_ra>
// kernel: tpu_custom_call.1
= control target key start
LH: loop header
LB: loop body
LE: loop exit
PB: predicated region body
PF: predicated region fallthrough
CT: control target
= control target key end

     0   :  { %6 = vsyncpa [#allocation3], 0  ;;  %s340_s0 = inlined_call_operand.hbm [shape: f32[8,128], index: 0, kind: input, shape index: {}]   ;;  %s341_s1 = inlined_call_operand.hbm [shape: f32[8,128], index: 1, kind: output, shape index: {}]  }
   0x1   :  { %7 = vsyncpa [#allocation4], 0  ;;  %s261_s6 = smov 0  }
   0x2 LB: > { %s144_s7 = sadd.s32 4294967295, %s247_s6   ;;  %p145_p0 = scmp.ge.s32.totalorder %s247_s6, 1  ;;  %s247_s6 = sphi %s261_s6, %s13_s6  }
   0x3   : > { %p60_p1 = scmp.lt.s32.totalorder %s247_s6, 3  ;;  %p275_p3 = scmp.eq.s32.totalorder %s144_s7, 0 }
   0x4   : > { %s249_s10 = smov [#allocation2]   ;;  %s179_s15 = scalar_lea.hbm %s340_s0, 128 }
   0x5   : > { %p269_p2 = pnand %p145_p0, %p60_p1  ;;  %s73_s11 = sshll.u32 %s249_s10, 4  ;;  %s74_s11 = int_to_ptr.vmem [resolvable:$true] %s73_s11 }
   0x6   : > { %s346_s9 = scalar_select %p275_p3, 1, 0 }
   0x7   : > { %s345_s8 = scalar_select %p269_p2, 1, 0 }
   0x8   : > { %p161_p4 = pneg %p269_p2  ;;  %p180_p6 = scmp.ne.s32.totalorder %s340_s0, %s179_s15 }
   0x9   : > { %p186_p10 = scmp.lt.u32.totalorder %s179_s15, %s340_s0 }
   0xa   : > { %p283_p5 = pnand %p275_p3, %p161_p4 }
   0xc   : > { %p181_p7 = pneg %p283_p5 }
   0xe   : > { %p182_p8 = pnand %p181_p7, %p180_p6 }
  0x10   : > { %p183_p9 = pneg %p182_p8 }
  0x12   : > { %p188_p11 = pnand %p186_p10, %p183_p9 }
  0x14   : > { %191 = shalt.err (!%p188_p11)
}
  0x15   : > { %s192_s20 = scalar_lea.vmem %s74_s11, 128  ;;  %p200_p1 = scmp.lt.s32.totalorder %s74_s11, %s74_s11 }
  0x16   : > { %p193_p12 = scmp.ne.s32.totalorder %s74_s11, %s192_s20  ;;  %p201_p4 = scmp.lt.s32.totalorder %s192_s20, %s192_s20 }
  0x18   : > { %p195_p13 = pnand %p193_p12, %p181_p7  ;;  %p202_p3 = por %p201_p4, %p200_p1 }
  0x1a   : > { %p196_p0 = pneg %p195_p13 }
  0x1c   : > { %p203_p2 = pnand %p202_p3, %p196_p0 }
  0x1e   : > { %206 = shalt.err (!%p203_p2)
}
  0x1f   : > { %164 = dma.hbm_to_vmem [thread:$0]  (!%p283_p5), %s340_s0, 128, %s74_s11, [#allocation3]  }
  0x20   : > { %p348_p6 = scmp.ne.s32.totalorder %s345_s8, 0 }
  0x21   : > { %p349_p8 = scmp.ne.s32.totalorder (!%p348_p6), %s346_s9, 0 }
  0x22   : > { %86 = sbr.rel (%p348_p6) target bundleno = 67 (0x43), region = 24 }
  0x29   : > { %238 = dma.done.wait (%p349_p8), [#allocation3], 128  }
  0x2a   : > { %240 = vsyncadd (%p349_p8), [#allocation3], 4294967168  ;;  %s250_s23 = smov [#allocation5]   ;;  %p311_p2 = scmp.eq.s32.totalorder %s144_s7, 1  ;;  %v96_v0 = vld [vmem:[#allocation2] sm:$0xff] }
  0x2b   : > { %s105_s24 = sshll.u32 %s250_s23, 4  ;;  %97 = vst [vmem:[#allocation5] sm:$0xff] %v96_v0  ;;  %s106_s24 = int_to_ptr.vmem [resolvable:$true] %s105_s24 }
  0x2c   : > { %s207_s26 = scalar_lea.vmem %s106_s24, 128  ;;  %p214_p9 = scmp.lt.s32.totalorder %s106_s24, %s106_s24 }
  0x2d   : > { %p208_p3 = scmp.ne.s32.totalorder %s106_s24, %s207_s26  ;;  %p215_p10 = scmp.lt.s32.totalorder %s207_s26, %s207_s26 }
  0x2f   : > { %p209_p5 = pnand %p208_p3, %p311_p2  ;;  %p216_p11 = por %p215_p10, %p214_p9 }
  0x31   : > { %p210_p7 = pneg %p209_p5 }
  0x33   : > { %p217_p12 = pnand %p216_p11, %p210_p7 }
  0x35   : > { %220 = shalt.err (!%p217_p12)
}
  0x36   : > { %s221_s29 = scalar_lea.hbm %s341_s1, 128 }
  0x37   : > { %p222_p13 = scmp.ne.s32.totalorder %s341_s1, %s221_s29  ;;  %p227_p4 = scmp.lt.u32.totalorder %s221_s29, %s341_s1 }
  0x39   : > { %p223_p0 = pnand %p222_p13, %p311_p2 }
  0x3b   : > { %p224_p1 = pneg %p223_p0 }
  0x3d   : > { %p229_p6 = pnand %p227_p4, %p224_p1 }
  0x3f   : > { %232 = shalt.err (!%p229_p6)
}
  0x40   : > { %158 = dma.vmem_to_hbm [thread:$0]  (%p311_p2), %s106_s24, 128, %s341_s1, [#allocation4]  }
  0x41   : > { %242 = dma.done.wait (%p311_p2), [#allocation4], 128  }
  0x42   : > { %244 = vsyncadd (%p311_p2), [#allocation4], 4294967168 }
  0x43 PF: > { %s13_s6 = sadd.s32 1, %s247_s6  }
  0x44   : > { %p10_p8 = scmp.ge.s32.totalorder %s13_s6, 4  }
  0x46   :  { %12 = sbr.rel (!%p10_p8) target bundleno = 2 (0x2), region = 53 }
  0x4d   :  { %118 = vsyncpa [#allocation3], 1 }
  0x4e   :  { %120 = vsyncpa [#allocation3 + $0x1], 1 }
  0x4f   :  { %121 = vsyncpa [#allocation4], 1 }
  0x50   :  { %123 = vsyncpa [#allocation4 + $0x1], 1 }

// kernel: tpu_custom_call.1
= control target key start
LH: loop header
LB: loop body
LE: loop exit
PB: predicated region body
PF: predicated region fallthrough
CT: control target
= control target key end

     0   :  { %s3488_s0 = inlined_call_operand.<no memory space> [shape: s32[1], index: 0, kind: input, shape index: {}]   ;;  %s3489_s1 = inlined_call_operand.vmem [shape: f32[4,16,32], index: 1, kind: input, shape index: {}]   ;;  %s3490_s2 = inlined_call_operand.vmem [shape: f32[16,32], index: 2, kind: input, shape index: {}]   ;;  %s3491_s3 = inlined_call_operand.hbm [shape: f32[4,4,32], index: 3, kind: input, shape index: {}]   ;;  %s3492_s4 = inlined_call_operand.hbm [shape: f32[4,16,16], index: 4, kind: input, shape index: {}]   ;;  %s3493_s5 = inlined_call_operand.vmem [shape: f32[1,32], index: 5, kind: input, shape index: {}]   ;;  %s3494_s6 = inlined_call_operand.hbm [shape: f32[1,32], index: 6, kind: input, shape index: {}]   ;;  %s3495_s7 = inlined_call_operand.hbm [shape: bf16[32,96], index: 7, kind: input, shape index: {}]   ;;  %s3496_s8 = inlined_call_operand.hbm [shape: f32[1,96], index: 8, kind: input, shape index: {}]   ;;  %s3497_s9 = inlined_call_operand.vmem [shape: bf16[32,32], index: 9, kind: input, shape index: {}]   ;;  %s3498_s10 = inlined_call_operand.hbm [shape: f32[1,32], index: 10, kind: input, shape index: {}]   ;;  %s3499_s11 = inlined_call_operand.hbm [shape: f32[1,32], index: 11, kind: input, shape index: {}]   ;;  %s3500_s12 = inlined_call_operand.hbm [shape: f32[1,32], index: 12, kind: input, shape index: {}]   ;;  %s3501_s13 = inlined_call_operand.vmem [shape: bf16[32,128], index: 13, kind: input, shape index: {}]   ;;  %s3502_s14 = inlined_call_operand.vmem [shape: f32[1,128], index: 14, kind: input, shape index: {}]   ;;  %s3503_s15 = inlined_call_operand.vmem [shape: bf16[128,32], index: 15, kind: input, shape index: {}]   ;;  %s3504_s16 = inlined_call_operand.vmem [shape: f32[1,32], index: 16, kind: input, shape index: {}]   ;;  %s3505_s17 = inlined_call_operand.hbm [shape: f32[4,16,32], index: 17, kind: output, shape index: {}]  }
   0x1   :  { %3512 = sst [smem:[#allocation25_spill]] %s3488_s0 }
   0x2   :  { %3513 = sst [smem:[#allocation26_spill]] %s3489_s1  ;;  %s3525_s26 = sld [smem:[#allocation25_spill]] }
   0x3   :  { %3514 = sst [smem:[#allocation27_spill]] %s3491_s3 }
   0x4   :  { %3515 = sst [smem:[#allocation28_spill]] %s3494_s6 }
   0x5   :  { %3516 = sst [smem:[#allocation29_spill]] %s3495_s7 }
   0x6   :  { %3517 = sst [smem:[#allocation30_spill]] %s3496_s8 }
   0x7   :  { %3518 = sst [smem:[#allocation31_spill]] %s3498_s10 }
   0x8   :  { %3519 = sst [smem:[#allocation32_spill]] %s3499_s11 }
   0x9   :  { %3520 = sst [smem:[#allocation33_spill]] %s3501_s13 }
   0xa   :  { %3521 = sst [smem:[#allocation34_spill]] %s3502_s14 }
   0xb   :  { %3522 = sst [smem:[#allocation35_spill]] %s3503_s15 }
   0xc   :  { %3523 = sst [smem:[#allocation36_spill]] %s3504_s16 }
   0xd   :  { %3524 = sst [smem:[#allocation37_spill]] %s3505_s17 }
   0xe   :  { %22 = sst [smem:[#allocation2]] %s3525_s26 }
   0xf   :  { %23 = vsyncpa [#allocation4], 0 }
  0x10   :  { %25 = vsyncpa [#allocation4 + $0x1], 0 }
  0x11   :  { %26 = vsyncpa [#allocation7], 0 }
  0x12   :  { %28 = vsyncpa [#allocation7 + $0x1], 0 }
  0x13   :  { %29 = vsyncpa [#allocation10], 0 }
  0x14   :  { %30 = vsyncpa [#allocation13], 0 }
  0x15   :  { %31 = vsyncpa [#allocation16], 0 }
  0x16   :  { %32 = vsyncpa [#allocation5], 0 }
  0x17   :  { %34 = vsyncpa [#allocation5 + $0x1], 0  ;;  %s2888_s27 = smov 0   ;;  %s2890_s28 = smov 0  }
  0x18   :  { %s2892_s29 = smov 0   ;;  %s2894_s0 = smov 0  }
  0x19 LB: > { %s2770_s30 = smov [#allocation8]   ;;  %s2909_s19 = sadd.s32 4294967295, %s2768_s0   ;;  %s2768_s0 = sphi %s2894_s0, %s3562_s0   ;;  %s2764_s29 = sphi %s2892_s29, %s3561_s29   ;;  %s2760_s28 = sphi %s2890_s28, %s3560_s28   ;;  %s2756_s27 = sphi %s2888_s27, %s3559_s27  }
  0x1a   : > { %s465_s18 = sshll.u32 %s2770_s30, 4  ;;  %p2014_p0 = scmp.ge.s32.totalorder %s2768_s0, 1  ;;  %s466_s18 = int_to_ptr.vmem [resolvable:$true] %s465_s18 }
  0x1b   : > { %p3507_p1 = scmp.eq.s32.totalorder %s2909_s19, 0  ;;  %p443_p2 = scmp.lt.s32.totalorder %s2768_s0, 5 }
  0x1c   : > { %s2771_s20 = smov [#allocation9]   ;;  %s2772_s23 = smov [#allocation12]  }
  0x1d   : > { %p2914_p3 = pnand %p2014_p0, %p443_p2  ;;  %s475_s21 = sshll.u32 %s2771_s20, 4  ;;  %s2920_s21 = int_to_ptr.vmem [resolvable:$true] %s475_s21 }
  0x1e   : > { %s503_s24 = sshll.u32 %s2772_s23, 4  ;;  %s3528_s6 = sld [smem:[#allocation28_spill]]  ;;  %s2928_s24 = int_to_ptr.vmem [resolvable:$true] %s503_s24 }
  0x1f   : > { %s3526_s1 = scalar_select %p2914_p3, 1, 0 }
  0x20   : > { %p2249_p4 = pneg %p2914_p3 }
  0x22   : > { %p2924_p5 = pnand %p2249_p4, %p3507_p1 }
  0x24   : > { %s2454_s30 = scalar_lea.hbm %s3528_s6, 16  ;;  %p2938_p7 = pneg %p2924_p5 }
  0x25   : > { %p2455_p6 = scmp.ne.s32.totalorder %s3528_s6, %s2454_s30  ;;  %p2461_p10 = scmp.lt.u32.totalorder %s2454_s30, %s3528_s6 }
  0x27   : > { %p2457_p8 = pnand %p2938_p7, %p2455_p6 }
  0x29   : > { %p2458_p9 = pneg %p2457_p8 }
  0x2b   : > { %p2463_p11 = pnand %p2461_p10, %p2458_p9 }
  0x2d   : > { %2466 = shalt.err (!%p2463_p11)
}
  0x2e   : > { %s2467_s25 = scalar_lea.vmem %s466_s18, 16  ;;  %s2474_s16 = scalar_lea.vmem %s466_s18, 32 }
  0x2f   : > { %p2468_p12 = scmp.ne.s32.totalorder %s466_s18, %s2467_s25  ;;  %p2475_p2 = scmp.lt.s32.totalorder %s466_s18, %s466_s18 }
  0x30   : > { %p2476_p4 = scmp.lt.s32.totalorder %s2474_s16, %s2467_s25 }
  0x31   : > { %p2470_p13 = pnand %p2468_p12, %p2938_p7 }
  0x32   : > { %p2477_p1 = por %p2476_p4, %p2475_p2 }
  0x33   : > { %p2471_p0 = pneg %p2470_p13 }
  0x35   : > { %p2478_p3 = pnand %p2477_p1, %p2471_p0 }
  0x37   : > { %2481 = shalt.err (!%p2478_p3)
}
  0x38   : > { %2252 = dma.hbm_to_vmem [thread:$0]  (!%p2924_p5), %s3528_s6, 16, %s466_s18, [#allocation7]  }
  0x39   : > { %s3530_s7 = sld [smem:[#allocation29_spill]] }
  0x3f   : > { %s2482_s23 = scalar_lea.hbm %s3530_s7, 256 }
  0x40   : > { %p2483_p6 = scmp.ne.s32.totalorder %s3530_s7, %s2482_s23  ;;  %p2489_p1 = scmp.lt.u32.totalorder %s2482_s23, %s3530_s7 }
  0x42   : > { %p2485_p8 = pnand %p2483_p6, %p2938_p7 }
  0x44   : > { %p2486_p9 = pneg %p2485_p8 }
  0x46   : > { %p2491_p3 = pnand %p2489_p1, %p2486_p9 }
  0x48   : > { %2494 = shalt.err (!%p2491_p3)
}
  0x49   : > { %s2495_s18 = scalar_lea.vmem %s2920_s21, 256  ;;  %p2503_p13 = scmp.lt.s32.totalorder %s2920_s21, %s2920_s21 }
  0x4a   : > { %p2496_p10 = scmp.ne.s32.totalorder %s2920_s21, %s2495_s18  ;;  %p2504_p0 = scmp.lt.s32.totalorder %s2495_s18, %s2495_s18 }
  0x4c   : > { %p2498_p11 = pnand %p2496_p10, %p2938_p7  ;;  %p2505_p2 = por %p2504_p0, %p2503_p13 }
  0x4e   : > { %p2499_p12 = pneg %p2498_p11 }
  0x50   : > { %p2506_p4 = pnand %p2505_p2, %p2499_p12 }
  0x52   : > { %2509 = shalt.err (!%p2506_p4)
}
  0x53   : > { %s2773_s13 = smov 64   ;;  %s2774_s15 = smov 4  }
  0x54   : > { %2255 = dma.hbm_to_vmem [thread:$0]  (!%p2924_p5), %s3530_s7, 256, %s2920_s21, [#allocation10], %s2773_s13, %s2773_s13, %s2774_s15  }
  0x55   : > { %s3531_s10 = sld [smem:[#allocation31_spill]] }
  0x5b   : > { %s2510_s23 = scalar_lea.hbm %s3531_s10, 16 }
  0x5c   : > { %p2511_p6 = scmp.ne.s32.totalorder %s3531_s10, %s2510_s23  ;;  %p2517_p1 = scmp.lt.u32.totalorder %s2510_s23, %s3531_s10 }
  0x5e   : > { %p2513_p8 = pnand %p2511_p6, %p2938_p7 }
  0x60   : > { %p2514_p9 = pneg %p2513_p8 }
  0x62   : > { %p2519_p3 = pnand %p2517_p1, %p2514_p9 }
  0x64   : > { %2522 = shalt.err (!%p2519_p3)
}
  0x65   : > { %s2523_s21 = scalar_lea.vmem %s2928_s24, 16  ;;  %s2530_s13 = scalar_lea.vmem %s2928_s24, 32 }
  0x66   : > { %p2524_p10 = scmp.ne.s32.totalorder %s2928_s24, %s2523_s21  ;;  %p2531_p13 = scmp.lt.s32.totalorder %s2928_s24, %s2928_s24 }
  0x67   : > { %p2532_p0 = scmp.lt.s32.totalorder %s2530_s13, %s2523_s21 }
  0x68   : > { %p2526_p11 = pnand %p2524_p10, %p2938_p7 }
  0x69   : > { %p2533_p2 = por %p2532_p0, %p2531_p13 }
  0x6a   : > { %p2527_p12 = pneg %p2526_p11 }
  0x6c   : > { %p2534_p4 = pnand %p2533_p2, %p2527_p12 }
  0x6e   : > { %2537 = shalt.err (!%p2534_p4)
}
  0x6f   : > { %2261 = dma.hbm_to_vmem [thread:$0]  (!%p2924_p5), %s3531_s10, 16, %s2928_s24, [#allocation13]  }
  0x70   : > { %s2775_s17 = smov [#allocation11]   ;;  %s2776_s14 = smov [#allocation14]  }
  0x71   : > { %s489_s26 = sshll.u32 %s2775_s17, 4  ;;  %s514_s30 = sshll.u32 %s2776_s14, 4  ;;  %s490_s26 = int_to_ptr.vmem [resolvable:$true] %s489_s26  ;;  %s515_s30 = int_to_ptr.vmem [resolvable:$true] %s514_s30 }
  0x72   : > { %s3532_s8 = sld [smem:[#allocation30_spill]] }
  0x78   : > { %s2538_s16 = scalar_lea.hbm %s3532_s8, 16 }
  0x79   : > { %p2539_p6 = scmp.ne.s32.totalorder %s3532_s8, %s2538_s16  ;;  %p2545_p1 = scmp.lt.u32.totalorder %s2538_s16, %s3532_s8 }
  0x7b   : > { %p2541_p8 = pnand %p2539_p6, %p2938_p7 }
  0x7d   : > { %p2542_p9 = pneg %p2541_p8 }
  0x7f   : > { %p2547_p3 = pnand %p2545_p1, %p2542_p9 }
  0x81   : > { %2550 = shalt.err (!%p2547_p3)
}
  0x82   : > { %s2551_s24 = scalar_lea.vmem %s490_s26, 16  ;;  %s2558_s15 = scalar_lea.vmem %s490_s26, 32 }
  0x83   : > { %p2552_p10 = scmp.ne.s32.totalorder %s490_s26, %s2551_s24  ;;  %p2559_p13 = scmp.lt.s32.totalorder %s490_s26, %s490_s26 }
  0x84   : > { %p2560_p0 = scmp.lt.s32.totalorder %s2558_s15, %s2551_s24 }
  0x85   : > { %p2554_p11 = pnand %p2552_p10, %p2938_p7 }
  0x86   : > { %p2561_p2 = por %p2560_p0, %p2559_p13 }
  0x87   : > { %p2555_p12 = pneg %p2554_p11 }
  0x89   : > { %p2562_p4 = pnand %p2561_p2, %p2555_p12 }
  0x8b   : > { %2565 = shalt.err (!%p2562_p4)
}
  0x8c   : > { %2258 = dma.hbm_to_vmem [thread:$0]  (!%p2924_p5), %s3532_s8, 16, %s490_s26, [#allocation10]  }
  0x8d   : > { %s3533_s11 = sld [smem:[#allocation32_spill]] }
  0x93   : > { %s2566_s16 = scalar_lea.hbm %s3533_s11, 16 }
  0x94   : > { %p2567_p6 = scmp.ne.s32.totalorder %s3533_s11, %s2566_s16  ;;  %p2573_p1 = scmp.lt.u32.totalorder %s2566_s16, %s3533_s11 }
  0x96   : > { %p2569_p8 = pnand %p2567_p6, %p2938_p7 }
  0x98   : > { %p2570_p9 = pneg %p2569_p8 }
  0x9a   : > { %p2575_p3 = pnand %p2573_p1, %p2570_p9 }
  0x9c   : > { %2578 = shalt.err (!%p2575_p3)
}
  0x9d   : > { %s2579_s24 = scalar_lea.vmem %s515_s30, 16  ;;  %s2586_s26 = scalar_lea.vmem %s515_s30, 32 }
  0x9e   : > { %p2580_p10 = scmp.ne.s32.totalorder %s515_s30, %s2579_s24  ;;  %p2587_p13 = scmp.lt.s32.totalorder %s515_s30, %s515_s30 }
  0x9f   : > { %p2588_p0 = scmp.lt.s32.totalorder %s2586_s26, %s2579_s24 }
  0xa0   : > { %p2582_p11 = pnand %p2580_p10, %p2938_p7 }
  0xa1   : > { %p2589_p2 = por %p2588_p0, %p2587_p13 }
  0xa2   : > { %p2583_p12 = pneg %p2582_p11 }
  0xa4   : > { %p2590_p4 = pnand %p2589_p2, %p2583_p12 }
  0xa6   : > { %2593 = shalt.err (!%p2590_p4)
}
  0xa7   : > { %2264 = dma.hbm_to_vmem [thread:$0]  (!%p2924_p5), %s3533_s11, 16, %s515_s30, [#allocation13]  }
  0xa8   : > { %s2777_s14 = smov [#allocation15]   ;;  %s2594_s18 = scalar_lea.hbm %s3500_s12, 16 }
  0xa9   : > { %s525_s23 = sshll.u32 %s2777_s14, 4  ;;  %p2595_p6 = scmp.ne.s32.totalorder %s3500_s12, %s2594_s18  ;;  %s526_s23 = int_to_ptr.vmem [resolvable:$true] %s525_s23 }
  0xaa   : > { %p2601_p1 = scmp.lt.u32.totalorder %s2594_s18, %s3500_s12 }
  0xab   : > { %p2597_p8 = pnand %p2595_p6, %p2938_p7 }
  0xad   : > { %p2598_p9 = pneg %p2597_p8 }
  0xaf   : > { %p2603_p3 = pnand %p2601_p1, %p2598_p9 }
  0xb1   : > { %2606 = shalt.err (!%p2603_p3)
}
  0xb2   : > { %s2607_s30 = scalar_lea.vmem %s526_s23, 16  ;;  %s2614_s26 = scalar_lea.vmem %s526_s23, 32 }
  0xb3   : > { %p2608_p10 = scmp.ne.s32.totalorder %s526_s23, %s2607_s30  ;;  %p2615_p13 = scmp.lt.s32.totalorder %s526_s23, %s526_s23 }
  0xb4   : > { %p2616_p0 = scmp.lt.s32.totalorder %s2614_s26, %s2607_s30 }
  0xb5   : > { %p2610_p11 = pnand %p2608_p10, %p2938_p7 }
  0xb6   : > { %p2617_p2 = por %p2616_p0, %p2615_p13 }
  0xb7   : > { %p2611_p12 = pneg %p2610_p11 }
  0xb9   : > { %p2618_p4 = pnand %p2617_p2, %p2611_p12 }
  0xbb   : > { %2621 = shalt.err (!%p2618_p4)
}
  0xbc   : > { %2267 = dma.hbm_to_vmem [thread:$0]  (!%p2924_p5), %s3500_s12, 16, %s526_s23, [#allocation16]  }
  0xbd   : > { %s2013_s20 = sadd.s32 4294967294, %s2768_s0   ;;  %s3057_s22 = sadd.s32 1, %s2768_s0  }
  0xbe   : > { %s112_s14 = ssub.s32 %s2768_s0, %s3057_s22  ;;  %s115_s25 = sadd.s32 1, %s2764_s29 }
  0xbf   : > { %p113_p7 = scmp.eq.s32.totalorder %s112_s14, 0  ;;  %p122_p6 = scmp.ne.s32.totalorder %s2764_s29, %s2760_s28 }
  0xc0   : > { %p123_p8 = scmp.eq.s32.totalorder %s2768_s0, 0  ;;  %p128_p9 = scmp.ne.s32.totalorder %s2760_s28, %s2756_s27 }
  0xc1   : > { %s3068_s16 = scalar_select %p113_p7, %s2764_s29, %s115_s25  }
  0xc2   : > { %p3070_p1 = por %p123_p8, %p122_p6  ;;  %p3535_p3 = scmp.eq.s32.totalorder %s2909_s19, 0 }
  0xc3   : > { %p430_p10 = scmp.eq.s32.totalorder %s2909_s19, 3  ;;  %p436_p11 = scmp.eq.s32.totalorder %s2013_s20, 3 }
  0xc4   : > { %p3076_p5 = por %p3535_p3, %p128_p9  ;;  %p2285_p12 = scmp.lt.s32.totalorder %s2768_s0, 4 }
  0xc5   : > { %s3083_s21 = sand.u32 1, %s2764_s29   ;;  %p3085_p13 = por %p430_p10, %p122_p6 }
  0xc6   : > { %p3089_p0 = por %p436_p11, %p128_p9  ;;  %s2022_s24 = sshll.u32 %s3083_s21, 2 }
  0xc7   : > { %s3537_s13 = scalar_select %p3085_p13, 1, 0 }
  0xc8   : > { %s3538_s6 = scalar_select %p3089_p0, 1, 0 }
  0xc9   : > { %s2023_s30 = sshll.u32 %s2768_s0, 6  ;;  %s3539_s3 = sld [smem:[#allocation27_spill]] }
  0xca   : > { %s560_s20 = scalar_lea.vmem [#allocation3], %s2022_s24  ;;  %p3104_p2 = pnand %p2285_p12, %p3070_p1 }
  0xcb   : > { %s567_s14 = sshll.u32 %s560_s20, 4  ;;  %s2024_s7 = sshll.u32 %s3083_s21, 4  ;;  %s3100_s14 = int_to_ptr.vmem [resolvable:$true] %s567_s14 }
  0xcc   : > { %s557_s26 = scalar_lea.sflag [#allocation4], %s3083_s21  ;;  %p2624_p7 = pneg %p3104_p2 }
  0xcf   : > { %s3098_s17 = scalar_lea.hbm %s3539_s3, %s2023_s30  ;;  %s2627_s18 = scalar_lea.hbm %s3539_s3, 256 }
  0xd0   : > { %s2622_s30 = scalar_lea.hbm %s3098_s17, 64  ;;  %p2628_p9 = scmp.lt.u32.totalorder %s3098_s17, %s3539_s3 }
  0xd1   : > { %p2623_p4 = scmp.ne.s32.totalorder %s3098_s17, %s2622_s30  ;;  %p2629_p1 = scmp.lt.u32.totalorder %s2627_s18, %s2622_s30 }
  0xd2   : > { %p2631_p10 = scmp.lt.u32.totalorder %s2622_s30, %s3098_s17 }
  0xd3   : > { %p2625_p6 = pnand %p2624_p7, %p2623_p4  ;;  %p2630_p3 = por %p2629_p1, %p2628_p9 }
  0xd5   : > { %p2626_p8 = pneg %p2625_p6  ;;  %p2632_p11 = por %p2631_p10, %p2630_p3 }
  0xd7   : > { %p2633_p12 = pnand %p2632_p11, %p2626_p8 }
  0xd9   : > { %2636 = shalt.err (!%p2633_p12)
}
  0xda   : > { %s2637_s8 = scalar_lea.vmem %s3100_s14, 64  ;;  %s2778_s24 = smov [#allocation3]  }
  0xdb   : > { %p2638_p4 = scmp.ne.s32.totalorder %s3100_s14, %s2637_s8  ;;  %s2642_s15 = sshll.u32 %s2778_s24, 4  ;;  %s2643_s15 = int_to_ptr.vmem [resolvable:$false] %s2642_s15 }
  0xdc   : > { %s2644_s10 = scalar_lea.vmem %s2643_s15, 128  ;;  %p2645_p13 = scmp.lt.s32.totalorder %s3100_s14, %s2643_s15 }
  0xdd   : > { %p2640_p6 = pnand %p2638_p4, %p2624_p7  ;;  %p2646_p9 = scmp.lt.s32.totalorder %s2644_s10, %s2637_s8 }
  0xdf   : > { %p2641_p0 = pneg %p2640_p6  ;;  %p2647_p1 = por %p2646_p9, %p2645_p13 }
  0xe1   : > { %p2648_p3 = pnand %p2647_p1, %p2641_p0 }
  0xe3   : > { %2651 = shalt.err (!%p2648_p3)
}
  0xe4   : > { %2271 = dma.hbm_to_vmem [thread:$0]  (!%p3104_p2), %s3098_s17, 64, %s3100_s14, %s557_s26  }
  0xe5   : > { %s578_s30 = scalar_lea.vmem [#allocation6], %s2024_s7  ;;  %s2082_s20 = sshll.u32 %s2768_s0, 8 }
  0xe6   : > { %s585_s18 = sshll.u32 %s578_s30, 4  ;;  %s3144_s15 = scalar_lea.hbm %s3492_s4, %s2082_s20  ;;  %s3138_s18 = int_to_ptr.vmem [resolvable:$true] %s585_s18 }
  0xe7   : > { %s3541_s10 = sand.u32 1, %s2768_s0   ;;  %s2652_s11 = scalar_lea.hbm %s3144_s15, 256 }
  0xe8   : > { %s3148_s3 = scalar_lea.sflag [#allocation7], %s3541_s10  ;;  %p2653_p13 = scmp.ne.s32.totalorder %s3144_s15, %s2652_s11 }
  0xe9   : > { %s2657_s17 = scalar_lea.hbm %s3492_s4, 1024  ;;  %p2658_p10 = scmp.lt.u32.totalorder %s3144_s15, %s3492_s4 }
  0xea   : > { %p2655_p0 = pnand %p2653_p13, %p2624_p7  ;;  %p2659_p11 = scmp.lt.u32.totalorder %s2657_s17, %s2652_s11 }
  0xeb   : > { %p2661_p4 = scmp.lt.u32.totalorder %s2652_s11, %s3144_s15 }
  0xec   : > { %p2656_p8 = pneg %p2655_p0  ;;  %p2660_p12 = por %p2659_p11, %p2658_p10 }
  0xee   : > { %p2662_p6 = por %p2661_p4, %p2660_p12 }
  0xf0   : > { %p2663_p9 = pnand %p2662_p6, %p2656_p8 }
  0xf2   : > { %2666 = shalt.err (!%p2663_p9)
}
  0xf3   : > { %s2667_s30 = scalar_lea.vmem %s3138_s18, 256  ;;  %s2779_s20 = smov [#allocation6]  }
  0xf4   : > { %p2668_p1 = scmp.ne.s32.totalorder %s3138_s18, %s2667_s30  ;;  %s2672_s24 = sshll.u32 %s2779_s20, 4  ;;  %s2673_s24 = int_to_ptr.vmem [resolvable:$false] %s2672_s24 }
  0xf5   : > { %s2674_s8 = scalar_lea.vmem %s2673_s24, 512  ;;  %p2675_p0 = scmp.lt.s32.totalorder %s3138_s18, %s2673_s24 }
  0xf6   : > { %p2670_p3 = pnand %p2668_p1, %p2624_p7  ;;  %p2676_p10 = scmp.lt.s32.totalorder %s2674_s8, %s2667_s30 }
  0xf8   : > { %p2671_p13 = pneg %p2670_p3  ;;  %p2677_p11 = por %p2676_p10, %p2675_p0 }
  0xfa   : > { %p2678_p12 = pnand %p2677_p11, %p2671_p13 }
  0xfc   : > { %2681 = shalt.err (!%p2678_p12)
}
  0xfd   : > { %s2780_s11 = smov 128   ;;  %s2781_s10 = smov 8  }
  0xfe   : > { %2274 = dma.hbm_to_vmem [thread:$0]  (!%p3104_p2), %s3144_s15, 256, %s3138_s18, %s3148_s3, %s2780_s11, %s2780_s11, %s2781_s10  }
  0xff   : > { %p3542_p7 = scmp.ne.s32.totalorder %s3526_s1, 0 }
 0x100   : > { %s3177_s7 = sand.u32 (!%p3542_p7), 1, %s2760_s28  }
 0x101   : > { %597 = sbr.rel (%p3542_p7) target bundleno = 3233 (0xca1), region = 88  ;;  %s2028_s21 = sshll.u32 (!%p3542_p7), %s3177_s7, 2 }
 0x102   : > { %s600_s17 = scalar_lea.sflag (!%p3542_p7), [#allocation4], %s3177_s7  ;;  %s603_s14 = scalar_lea.vmem (!%p3542_p7), [#allocation3], %s2028_s21 }
 0x108   : > { %2727 = dma.done.wait (%p3076_p5), %s600_s17, 64  }
 0x109   : > { %2729 = vsyncadd (%p3076_p5), %s600_s17, 4294967232  ;;  %s608_s3 = sand.u32 1, %s2909_s19   ;;  %s2029_s1 = sshll.u32 %s3177_s7, 4 }
 0x10a   : > { %s609_s25 = scalar_lea.sflag [#allocation7], %s608_s3  ;;  %s3189_s18 = scalar_lea.vmem [#allocation6], %s2029_s1 }
 0x10b   : > { %2731 = dma.done.wait (%p3076_p5), %s609_s25, 256  }
 0x10c   : > { %2733 = vsyncadd (%p3076_p5), %s609_s25, 4294967040  ;;  %p3543_p2 = scmp.eq.s32.totalorder %s2909_s19, 0 }
 0x10e   : > { %2735 = dma.done.wait (%p3543_p2), [#allocation7], 16   ;;  %p3544_p8 = pmov %p3543_p2 }
 0x10f   : > { %p3545_p4 = pmov %p3543_p2 }
 0x110   : > { %2737 = vsyncadd (%p3544_p8), [#allocation7], 4294967280 }
 0x111   : > { %2739 = dma.done.wait (%p3545_p4), [#allocation10], 272   ;;  %p3546_p6 = pmov %p3543_p2 }
 0x112   : > { %p3547_p9 = pmov %p3543_p2 }
 0x113   : > { %2741 = vsyncadd (%p3546_p6), [#allocation10], 4294967024 }
 0x114   : > { %2743 = dma.done.wait (%p3547_p9), [#allocation13], 32   ;;  %p3548_p1 = pmov %p3543_p2 }
 0x116   : > { %2745 = vsyncadd (%p3548_p1), [#allocation13], 4294967264  ;;  %p3549_p5 = pmov %p3548_p1 }
 0x117   : > { %p3550_p3 = pmov %p3548_p1 }
 0x118   : > { %2747 = dma.done.wait (%p3549_p5), [#allocation16], 16  }
 0x119   : > { %2749 = vsyncadd (%p3550_p3), [#allocation16], 4294967280  ;;  %v754_v0 = vlaneseq  ;;  %v2782_v1 = vmov 0.0   ;;  %vm773_vm0 = vcmask 1043456   ;;  %vm766_vm1 = vcmask 31744   ;;  %s3225_s23 = sld [smem:[#allocation2]] }
 0x11a   : > { %2147 = vmatprep.subr.bf16.mxu0 %v2782_v1  ;;  %v708_v6 = vld [vmem:[%s603_s14] sm:$0xf]  ;;  %p697_p13 = scmp.lt.s32.totalorder %s2909_s19, 3  ;;  %s3551_s21 = sld [smem:[#allocation26_spill]]  ;;  %v707_v16 = vld [vmem:[%s3490_s2 + $0x8] sm:$0xff]  ;;  %vm871_vm4 = vcmask 261120  }
 0x11b   : > { %v3212_v2 = vshrl.u32 %v754_v0, 7  ;;  %v3214_v3 = vand.u32 127, %v754_v0  ;;  %2122 = vmatprep.subr.msk.mxu1 %vm773_vm0, %v708_v6  ;;  %v706_v14 = vld [vmem:[%s3490_s2] sm:$0xff]  ;;  %v2392_v47 = vld [vmem:[#allocation9] sm:$0xff]   ;;  %v2393_v48 = vld [vmem:[#allocation9 + $0x8] sm:$0xff]   ;;  %vm2783_vm5 = vmmov 0  }
 0x11c   : > { %2123 = vmatpush3.msk.msra.mxu1 %vm773_vm0, %v708_v6  ;;  %s698_s15 = scalar_select %p697_p13, %s2909_s19, 3  ;;  %2149 = vmatprep.mubr.msk.bf16.mxu0 %vm2783_vm5, %v2782_v1  ;;  %v2044_v57 = vld [vmem:[%s3493_s5] ss:$0 sm:$0xff]  ;;  %v2045_v61 = vld [vmem:[#allocation8] ss:$0 sm:$0xff]  ;;  %vm1042_vm6 = vcmask 64512  }
 0x11d   : > { %v759_v4 = vadd.s32 1, %v3214_v3  ;;  %v3218_v5 = vadd.s32 8, %v3212_v2  ;;  %2127 = vmatprep.subr.bf16.mxu1 %v2782_v1  ;;  %v2046_v6 = vld [vmem:[#allocation11] ss:$0 sm:$0xff]  ;;  %s2787_s24 = smov 96   ;;  %vm1028_vm7 = vcmp.le.s32.totalorder %v3214_v3, %v3212_v2  ;;  %vm1240_vm9 = vcmask 130048  }
 0x11e   : > { %s2083_s20 = sshll.u32 %s698_s15, 4  ;;  %s2790_s10 = smov 8   ;;  %vm1549_vm10 = vcmask 195584  }
 0x11f   : > { %vm760_vm2 = vcmp.eq.s32.totalorder %v3212_v2, %v759_v4  ;;  %vm761_vm3 = vcmp.eq.s32.totalorder %v3218_v5, %v759_v4  ;;  %p852_p0 = scmp.gt.s32.totalorder %s3225_s23, 0  ;;  %p747_p10 = scmp.eq.s32.totalorder %s3225_s23, 0  ;;  %vm1029_vm8 = vcmp.le.s32.totalorder %v3214_v3, %v3218_v5 }
 0x120   : > { %v2039_v7 = vsel %vm760_vm2, 1.0, %v2782_v1  ;;  %v2040_v8 = vsel %vm761_vm3, 1.0, %v2782_v1  ;;  %s701_s17 = scalar_lea.vmem %s3551_s21, %s2083_s20  ;;  %s2786_s20 = smov 104  }
 0x121   : > { %2124 = vmatprep.mubr.msk.f32.mxu1 %vm766_vm1, %v2039_v7  ;;  %v854_v9 = vsel %vm766_vm1, %v2039_v7, 0.0  ;;  %v857_v10 = vsel %vm766_vm1, %v2040_v8, 0.0  ;;  %s853_s26 = scalar_select %p852_p0, 1.0, 0.0  ;;  %v704_v19 = vld [vmem:[%s701_s17] sm:$0xff]  ;;  %v705_v22 = vld [vmem:[%s701_s17 + $0x8] sm:$0xff] }
 0x122   : > { %855 = vadd.xlane.f32.xlu0 %v854_v9  ;;  %2125 = vmatmul.mubr.msk.f32.vlgmr.msra.gmra.mrb[0].mxu1 %vm766_vm1, %v2040_v8  ;;  %s748_s30 = scalar_select %p747_p10, 1.0, 0.0 }
 0x123   : > { %v860_v12 = vstv %s853_s26  ;;  %2128 = vmatpush3.bf16.msra.mxu1 %v2392_v47  ;;  %2131 = vmatprep.mubr.msk.bf16.mxu1 %vm2783_vm5, %v2782_v1  ;;  %s2784_s26 = smov 112   ;;  %p1032_p11 = scmp.lt.s32.totalorder %s3225_s23, 9 }
 0x124   : > { %v749_v13 = vstv %s748_s30  ;;  %2129 = vmatprep.subr.bf16.mxu1 %v2782_v1  ;;  %s2785_s30 = smov 120   ;;  %s2791_s21 = smov 16  }
 0x125   : > { %v750_v18 = vmul.f32 %v749_v13, %v706_v14  ;;  %v751_v21 = vmul.f32 %v749_v13, %v707_v16  ;;  %s1033_s8 = scalar_select %p1032_p11, 1.0, 0.0 }
 0x126   : > { %858 = vadd.xlane.f32.xlu0 %v857_v10  ;;  %s2792_s3 = smov 24   ;;  %s3554_s14 = sld [smem:[#allocation34_spill]] }
 0x127   : > { %v752_v24 = vadd.f32 %v750_v18, %v704_v19  ;;  %v753_v26 = vadd.f32 %v751_v21, %v705_v22  ;;  %2130 = vmatpush3.bf16.msra.mxu1 %v2393_v48  ;;  %s3555_s15 = sld [smem:[#allocation36_spill]]  ;;  %s3556_s11 = sld [smem:[#allocation37_spill]] }
 0x128   : > { %2135 = vmatprep.subr.bf16.mxu1 %v2782_v1  ;;  %p3557_p7 = scmp.ne.s32.totalorder %s3537_s13, 0  ;;  %s2793_s17 = smov [#allocation17]  }
 0x1af   : > { %v856_v11 = vpop.xlane.xlu0 %855 }
 0x1b0   : > { %v861_v17 = vmul.f32 %v860_v12, %v856_v11 }
 0x1b2   : > { %v863_v23 = vsub.f32 1.0, %v861_v17 }
 0x1b3   : > { %v859_v15 = vpop.xlane.xlu0 %858 }
 0x1b4   : > { %v862_v20 = vmul.f32 %v860_v12, %v859_v15  ;;  %v865_v28 = vmul.f32 %v863_v23, %v752_v24 }
 0x1b6   : > { %v864_v25 = vsub.f32 1.0, %v862_v20 }
 0x1b8   : > { %v866_v30 = vmul.f32 %v864_v25, %v753_v26 }
 0x1f5   : > { %v2126_v27 = vpop.f32.mrb[0].mxu1 }
 0x1f6   : > { %v843_v29 = vpop.f32.mrb[1].mxu1  ;;  %v868_v31 = vmul.f32 %v2126_v27, %v862_v20 }
 0x1f7   : > { %v867_v32 = vmul.f32 %v861_v17, %v843_v29 }
 0x1f8   : > { %v3242_v34 = vadd.f32 %v868_v31, %v866_v30 }
 0x1f9   : > { %v3240_v33 = vadd.f32 %v867_v32, %v865_v28 }
 0x1fa   : > { %v875_v36 = vsel %vm871_vm4, %v3242_v34, 0.0 }
 0x1fb   : > { %v872_v35 = vsel %vm871_vm4, %v3240_v33, 0.0 }
 0x1fc   : > { %873 = vadd.xlane.f32.xlu1 %v872_v35 }
 0x200   : > { %876 = vadd.xlane.f32.xlu1 %v875_v36 }
 0x289   : > { %v874_v37 = vpop.xlane.xlu1 %873 }
 0x28a   : > { %v879_v38 = vmul.f32 0.03125, %v874_v37 }
 0x28c   : > { %v881_v39 = vsub.f32 %v3240_v33, %v879_v38 }
 0x28d   : > { %v877_v40 = vpop.xlane.xlu1 %876 }
 0x28e   : > { %v880_v41 = vmul.f32 0.03125, %v877_v40  ;;  %v883_v42 = vmul.f32 %v881_v39, %v881_v39 }
 0x290   : > { %v882_v43 = vsub.f32 %v3242_v34, %v880_v41  ;;  %v885_v44 = vsel %vm871_vm4, %v883_v42, 0.0 }
 0x291   : > { %886 = vadd.xlane.f32.xlu0 %v885_v44 }
 0x292   : > { %v884_v45 = vmul.f32 %v882_v43, %v882_v43 }
 0x294   : > { %v888_v46 = vsel %vm871_vm4, %v884_v45, 0.0 }
 0x295   : > { %889 = vadd.xlane.f32.xlu1 %v888_v46 }
 0x31e   : > { %v887_v49 = vpop.xlane.xlu0 %886 }
 0x31f   : > { %v891_v50 = vmul.f32 0.03125, %v887_v49 }
 0x321   : > { %v893_v51 = vadd.f32 1e-05, %v891_v50 }
 0x322   : > { %v890_v52 = vpop.xlane.xlu1 %889 }
 0x323   : > { %2406 = vrsqrt.f32 %v893_v51  ;;  %v892_v53 = vmul.f32 0.03125, %v890_v52 }
 0x325   : > { %v894_v54 = vadd.f32 1e-05, %v892_v53  ;;  %v709_v53 = vld [vmem:[%s3189_s18] sm:$0xff] }
 0x327   : > { %2408 = vrsqrt.f32 %v894_v54  ;;  %v1034_v54 = vstv %s1033_s8 }
 0x32d   : > { %v2407_v55 = vpop.eup %2406 }
 0x32e   : > { %v897_v56 = vmul.f32 %v2407_v55, %v881_v39  ;;  %v710_v55 = vld [vmem:[%s3189_s18 + $0x8] sm:$0xff]  ;;  %s2789_s18 = smov 64  }
 0x330   : > { %v905_v59 = vmul.f32 %v2044_v57, %v897_v56  ;;  %v1035_v56 = vmul.f32 %v1034_v54, %v709_v53 }
 0x331   : > { %v2409_v58 = vpop.eup %2408 }
 0x332   : > { %v898_v60 = vmul.f32 %v2409_v58, %v882_v43  ;;  %v913_v63 = vadd.f32 %v2045_v61, %v905_v59  ;;  %v1036_v59 = vmul.f32 %v1034_v54, %v710_v55 }
 0x334   : > { %v906_v62 = vmul.f32 %v2044_v57, %v898_v60  ;;  %v2788_v57 = vmov -1e+30  }
 0x335   : > { %v1030_v58 = vsel %vm1028_vm7, 0.0, %v2788_v57  ;;  %v1031_v60 = vsel %vm1029_vm8, 0.0, %v2788_v57 }
 0x336   : > { %v914_v0 = vadd.f32 %v2045_v61, %v906_v62  ;;  %v1037_v61 = vadd.f32 %v1035_v56, %v1030_v58  ;;  %v1038_v62 = vadd.f32 %v1036_v59, %v1031_v60 }
 0x338   : > { %v915_v4 = vpack.c.bf16 %v914_v0, %v913_v63 }
 0x33a   : > { %2132 = vmatmul.mubr.msk.bf16.vlgmr.msra.gmra.mrb[4].mxu1 %vm871_vm4, %v915_v4 }
 0x33b   : > { %2137 = vmatprep.mubr.msk.bf16.mxu1 %vm2783_vm5, %v2782_v1 }
 0x40d   : > { %v971_v7 = vpop.f32.mrb[4].mxu1 }
 0x40e   : > { %v2133_v8 = vpop.f32.mrb[5].mxu1  ;;  %v972_v9 = vadd.f32 %v2046_v6, %v971_v7 }
 0x40f   : > { %v974_v10 = vpop.f32.mrb[6].mxu1 }
 0x410   : > { %v975_v11 = vadd.f32 %v2046_v6, %v974_v10  ;;  %v2134_v12 = vpop.f32.mrb[7].mxu1  ;;  %v978_v15 = vmul.f32 0.35355338, %v972_v9 }
 0x412   : > { %v2352_v13 = vpack.i.bf16 %v975_v11, %v972_v9  ;;  %v3264_v14 = vpack.c.bf16 %v975_v11, %v972_v9  ;;  %v979_v16 = vmul.f32 0.35355338, %v975_v11 }
 0x414   : > { %2353 = vrot.lane.b32.xlu1 %v2352_v13, %s2784_s26  ;;  %2348 = vrot.lane.b32.xlu0 %v2352_v13, %s2785_s30  ;;  %v2362_v17 = vpack.i.bf16 %v979_v16, %v978_v15  ;;  %v1000_v18 = vpack.c.bf16 %v979_v16, %v978_v15 }
 0x418   : > { %2358 = vrot.lane.b32.xlu1 %v2352_v13, %s2786_s20 }
 0x41c   : > { %1040 = vrot.lane.b32.xlu1 %v3264_v14, %s2787_s24 }
 0x420   : > { %2363 = vrot.lane.b32.xlu1 %v2362_v17, %s2785_s30  ;;  %s2084_s30 = sshll.u32 %s2909_s19, 8  ;;  %s1835_s19 = scalar_lea.sflag [#allocation5], %s3177_s7 }
 0x486   : > { %v2354_v19 = vpop.permute.xlu1 %2353  ;;  %v2349_v20 = vpop.permute.xlu0 %2348 }
 0x487   : > { %v2351_v21 = vunpack.i.h.bf16 %v2349_v20  ;;  %v2350_v22 = vunpack.i.l.bf16 %v2349_v20  ;;  %v2356_v23 = vunpack.i.h.bf16 %v2354_v19  ;;  %v2355_v24 = vunpack.i.l.bf16 %v2354_v19 }
 0x489   : > { %v3268_v25 = vpack.c.bf16 %v2351_v21, %v2350_v22  ;;  %v3271_v29 = vpack.c.bf16 %v2356_v23, %v2355_v24 }
 0x48a   : > { %v2359_v26 = vpop.permute.xlu1 %2358 }
 0x48b   : > { %v2361_v27 = vunpack.i.h.bf16 %v2359_v26  ;;  %v2360_v28 = vunpack.i.l.bf16 %v2359_v26  ;;  %1091 = vrot.lane.b32.xlu0 %v3268_v25, %s2787_s24 }
 0x48d   : > { %v3273_v30 = vpack.c.bf16 %v2361_v27, %v2360_v28 }
 0x48e   : > { %v1041_v31 = vpop.permute.xlu1 %1040 }
 0x48f   : > { %v1047_v32 = vsel %vm1042_vm6, %v1041_v31, 0  ;;  %1141 = vrot.lane.b32.xlu0 %v3271_v29, %s2787_s24  ;;  %1191 = vrot.lane.b32.xlu1 %v3273_v30, %s2787_s24 }
 0x490   : > { %2136 = vmatpush3.bf16.xpose.msra.mxu1 %v1047_v32 }
 0x491   : > { %2141 = vmatprep.subr.bf16.mxu1 %v2782_v1 }
 0x492   : > { %v2364_v35 = vpop.permute.xlu1 %2363 }
 0x493   : > { %2368 = vrot.lane.b32.xlu0 %v2362_v17, %s2784_s26  ;;  %2373 = vrot.lane.b32.xlu1 %v2362_v17, %s2786_s20  ;;  %v2366_v38 = vunpack.i.h.bf16 %v2364_v35  ;;  %v2365_v39 = vunpack.i.l.bf16 %v2364_v35  ;;  %s3552_s26 = sld [smem:[#allocation33_spill]]  ;;  %s696_s20 = scalar_lea.vmem [#allocation17], %s2029_s1 }
 0x494   : > { %s1848_s24 = sshll.u32 %s696_s20, 4  ;;  %s3443_s24 = int_to_ptr.vmem [resolvable:$true] %s1848_s24 }
 0x495   : > { %v1001_v43 = vpack.c.bf16 %v2366_v38, %v2365_v39  ;;  %s2682_s1 = scalar_lea.vmem %s3443_s24, 256 }
 0x496   : > { %p2683_p12 = scmp.ne.s32.totalorder %s3443_s24, %s2682_s1 }
 0x497   : > { %2138 = vmatmul.mubr.msk.bf16.vlgmr.msra.gmra.mrb[8].mxu1 %vm1042_vm6, %v1000_v18 }
 0x498   : > { %2143 = vmatprep.mubr.msk.bf16.mxu1 %vm2783_vm5, %v2782_v1  ;;  %p2684_p2 = pnand %p2683_p12, %p3557_p7 }
 0x49a   : > { %p2685_p8 = pneg %p2684_p2 }
 0x4fd   : > { %v1092_v36 = vpop.permute.xlu0 %1091 }
 0x4fe   : > { %v1097_v37 = vsel %vm1042_vm6, %v1092_v36, 0 }
 0x4ff   : > { %2142 = vmatpush3.bf16.xpose.msra.mxu1 %v1097_v37 }
 0x500   : > { %2153 = vmatprep.subr.bf16.mxu1 %v2782_v1 }
 0x501   : > { %v1142_v40 = vpop.permute.xlu0 %1141  ;;  %v1192_v41 = vpop.permute.xlu1 %1191 }
 0x502   : > { %v1147_v42 = vsel %vm1042_vm6, %v1142_v40, 0  ;;  %v1197_v46 = vsel %vm1042_vm6, %v1192_v41, 0 }
 0x503   : > { %2148 = vmatpush3.bf16.xpose.msra.mxu0 %v1147_v42 }
 0x504   : > { %2159 = vmatprep.subr.bf16.mxu0 %v2782_v1 }
 0x505   : > { %v2369_v44 = vpop.permute.xlu0 %2368  ;;  %v2374_v45 = vpop.permute.xlu1 %2373 }
 0x506   : > { %v2371_v47 = vunpack.i.h.bf16 %v2369_v44  ;;  %v2370_v48 = vunpack.i.l.bf16 %v2369_v44  ;;  %2144 = vmatmul.mubr.msk.bf16.vlgmr.msra.gmra.mrb[12].mxu1 %vm1042_vm6, %v1001_v43  ;;  %v2376_v50 = vunpack.i.h.bf16 %v2374_v45  ;;  %v2375_v51 = vunpack.i.l.bf16 %v2374_v45 }
 0x507   : > { %2154 = vmatpush3.bf16.xpose.msra.mxu1 %v1197_v46  ;;  %2155 = vmatprep.mubr.msk.bf16.mxu1 %vm2783_vm5, %v2782_v1 }
 0x508   : > { %v1002_v49 = vpack.c.bf16 %v2371_v47, %v2370_v48  ;;  %2165 = vmatprep.subr.bf16.mxu1 %v2782_v1  ;;  %v1003_v52 = vpack.c.bf16 %v2376_v50, %v2375_v51 }
 0x50a   : > { %2150 = vmatmul.mubr.msk.bf16.vlgmr.msra.gmra.mrb[0].mxu0 %vm1042_vm6, %v1002_v49 }
 0x50b   : > { %2161 = vmatprep.mubr.msk.bf16.mxu0 %vm2783_vm5, %v2782_v1 }
 0x50e   : > { %2156 = vmatmul.mubr.msk.bf16.vlgmr.msra.gmra.mrb[16].mxu1 %vm1042_vm6, %v1003_v52 }
 0x50f   : > { %2167 = vmatprep.mubr.msk.bf16.mxu1 %vm2783_vm5, %v2782_v1 }
 0x56a   : > { %v1083_v63 = vpop.f32.mrb[8].mxu1 }
 0x56b   : > { %v1084_v0 = vadd.f32 %v1083_v63, %v1037_v61  ;;  %v2139_v4 = vpop.f32.mrb[9].mxu1 }
 0x56c   : > { %v1086_v6 = vpop.f32.mrb[10].mxu1 }
 0x56d   : > { %v1087_v7 = vadd.f32 %v1086_v6, %v1038_v62  ;;  %v2140_v8 = vpop.f32.mrb[11].mxu1  ;;  %v1241_v2 = vsel %vm1240_vm9, %v1084_v0, -inf }
 0x56e   : > { %1242 = vmax.xlane.f32.xlu0 %v1241_v2 }
 0x56f   : > { %v1244_v9 = vsel %vm1240_vm9, %v1087_v7, -inf }
 0x570   : > { %1245 = vmax.xlane.f32.xlu1 %v1244_v9 }
 0x5d9   : > { %v1133_v3 = vpop.f32.mrb[12].mxu1 }
 0x5da   : > { %v1134_v5 = vadd.f32 %v1133_v3, %v1037_v61  ;;  %v2145_v10 = vpop.f32.mrb[13].mxu1 }
 0x5db   : > { %v1136_v11 = vpop.f32.mrb[14].mxu1 }
 0x5dc   : > { %v1137_v12 = vadd.f32 %v1136_v11, %v1038_v62  ;;  %v2146_v13 = vpop.f32.mrb[15].mxu1  ;;  %v1247_v15 = vsel %vm1240_vm9, %v1134_v5, -inf }
 0x5dd   : > { %v1183_v16 = vpop.f32.mrb[0].mxu0  ;;  %1248 = vmax.xlane.f32.xlu0 %v1247_v15 }
 0x5de   : > { %v2151_v17 = vpop.f32.mrb[1].mxu0  ;;  %v1184_v19 = vadd.f32 %v1183_v16, %v1037_v61  ;;  %v1250_v22 = vsel %vm1240_vm9, %v1137_v12, -inf }
 0x5df   : > { %v1186_v18 = vpop.f32.mrb[2].mxu0 }
 0x5e0   : > { %v1187_v20 = vadd.f32 %v1186_v18, %v1038_v62  ;;  %v2152_v21 = vpop.f32.mrb[3].mxu0  ;;  %v1253_v35 = vsel %vm1240_vm9, %v1184_v19, -inf }
 0x5e1   : > { %1251 = vmax.xlane.f32.xlu0 %v1250_v22  ;;  %v1233_v23 = vpop.f32.mrb[16].mxu1 }
 0x5e2   : > { %v2157_v24 = vpop.f32.mrb[17].mxu1  ;;  %v1256_v26 = vsel %vm1240_vm9, %v1187_v20, -inf  ;;  %v1234_v28 = vadd.f32 %v1233_v23, %v1037_v61 }
 0x5e3   : > { %1257 = vmax.xlane.f32.xlu1 %v1256_v26  ;;  %v1236_v27 = vpop.f32.mrb[18].mxu1 }
 0x5e4   : > { %v3310_v31 = vadd.f32 %v1236_v27, %v1038_v62  ;;  %v2158_v32 = vpop.f32.mrb[19].mxu1  ;;  %v1259_v37 = vsel %vm1240_vm9, %v1234_v28, -inf }
 0x5e5   : > { %1254 = vmax.xlane.f32.xlu0 %v1253_v35 }
 0x5e6   : > { %v1262_v36 = vsel %vm1240_vm9, %v3310_v31, -inf }
 0x5e7   : > { %1263 = vmax.xlane.f32.xlu1 %v1262_v36 }
 0x5e9   : > { %1260 = vmax.xlane.f32.xlu0 %v1259_v37 }
 0x5fb   : > { %v1243_v38 = vpop.xlane.xlu0 %1242 }
 0x5fc   : > { %v1265_v39 = vsub.f32 %v1084_v0, %v1243_v38 }
 0x5fd   : > { %v1246_v40 = vpop.xlane.xlu1 %1245 }
 0x5fe   : > { %v1273_v41 = vmul.f32 1.442695, %v1265_v39  ;;  %v1266_v42 = vsub.f32 %v1087_v7, %v1246_v40 }
 0x600   : > { %2410 = vpow2.f32 %v1273_v41  ;;  %v1275_v43 = vmul.f32 1.442695, %v1266_v42 }
 0x602   : > { %2412 = vpow2.f32 %v1275_v43 }
 0x60a   : > { %v3316_v44 = vpop.eup %2410 }
 0x60b   : > { %v1289_v45 = vsel %vm1240_vm9, %v3316_v44, 0.0 }
 0x60c   : > { %v3320_v46 = vpop.eup %2412  ;;  %1290 = vadd.xlane.f32.xlu0 %v1289_v45 }
 0x60d   : > { %v1292_v47 = vsel %vm1240_vm9, %v3320_v46, 0.0 }
 0x60e   : > { %1293 = vadd.xlane.f32.xlu1 %v1292_v47 }
 0x66a   : > { %v1249_v48 = vpop.xlane.xlu0 %1248 }
 0x66b   : > { %v1267_v49 = vsub.f32 %v1134_v5, %v1249_v48 }
 0x66d   : > { %v1277_v50 = vmul.f32 1.442695, %v1267_v49 }
 0x66e   : > { %v1252_v51 = vpop.xlane.xlu0 %1251 }
 0x66f   : > { %2414 = vpow2.f32 %v1277_v50  ;;  %v1268_v52 = vsub.f32 %v1137_v12, %v1252_v51 }
 0x670   : > { %v1258_v53 = vpop.xlane.xlu1 %1257 }
 0x671   : > { %v1279_v54 = vmul.f32 1.442695, %v1268_v52  ;;  %v1270_v55 = vsub.f32 %v1187_v20, %v1258_v53 }
 0x672   : > { %v1255_v56 = vpop.xlane.xlu0 %1254 }
 0x673   : > { %2416 = vpow2.f32 %v1279_v54  ;;  %v1283_v57 = vmul.f32 1.442695, %v1270_v55  ;;  %v1269_v58 = vsub.f32 %v1184_v19, %v1255_v56  ;;  %v2394_v55 = vld [vmem:[%s3497_s9] sm:$0xff]  }
 0x674   : > { %v1264_v10 = vpop.xlane.xlu1 %1263 }
 0x675   : > { %2418 = vpow2.f32 %v1283_v57  ;;  %v1281_v59 = vmul.f32 1.442695, %v1269_v58  ;;  %v1272_v11 = vsub.f32 %v3310_v31, %v1264_v10 }
 0x676   : > { %v1261_v60 = vpop.xlane.xlu0 %1260 }
 0x677   : > { %2420 = vpow2.f32 %v1281_v59  ;;  %v1271_v61 = vsub.f32 %v1234_v28, %v1261_v60  ;;  %v1287_v12 = vmul.f32 1.442695, %v1272_v11 }
 0x679   : > { %v2415_v62 = vpop.eup %2414  ;;  %v1285_v63 = vmul.f32 1.442695, %v1271_v61 }
 0x67a   : > { %v1295_v0 = vsel %vm1240_vm9, %v2415_v62, 0.0 }
 0x67b   : > { %2422 = vpow2.f32 %v1285_v63  ;;  %1296 = vadd.xlane.f32.xlu0 %v1295_v0  ;;  %v2395_v0 = vld [vmem:[%s3497_s9 + $0x8] sm:$0xff]  }
 0x67c   : > { %2424 = vpow2.f32 %v1287_v12 }
 0x67d   : > { %v2417_v4 = vpop.eup %2416 }
 0x67e   : > { %v1298_v6 = vsel %vm1240_vm9, %v2417_v4, 0.0 }
 0x67f   : > { %v2419_v7 = vpop.eup %2418  ;;  %1299 = vadd.xlane.f32.xlu1 %v1298_v6 }
 0x680   : > { %v1304_v9 = vsel %vm1240_vm9, %v2419_v7, 0.0 }
 0x681   : > { %v2421_v8 = vpop.eup %2420 }
 0x682   : > { %v1301_v2 = vsel %vm1240_vm9, %v2421_v8, 0.0 }
 0x683   : > { %1302 = vadd.xlane.f32.xlu0 %v1301_v2  ;;  %1305 = vadd.xlane.f32.xlu1 %v1304_v9 }
 0x685   : > { %v3328_v3 = vpop.eup %2422 }
 0x686   : > { %v1307_v5 = vsel %vm1240_vm9, %v3328_v3, 0.0  ;;  %v2425_v13 = vpop.eup %2424 }
 0x687   : > { %1308 = vadd.xlane.f32.xlu0 %v1307_v5  ;;  %v1310_v15 = vsel %vm1240_vm9, %v2425_v13, 0.0 }
 0x694   : > { %1380 = vrot.lane.b32.xlu1 %v3268_v25, %s2789_s18 }
 0x698   : > { %1427 = vrot.lane.b32.xlu1 %v3271_v29, %s2789_s18 }
 0x699   : > { %v1291_v16 = vpop.xlane.xlu0 %1290 }
 0x69b   : > { %v1294_v17 = vpop.xlane.xlu1 %1293 }
 0x69c   : > { %2426 = vrcp.f32 %v1294_v17 }
 0x69d   : > { %1333 = vrot.lane.b32.xlu0 %v3264_v14, %s2789_s18  ;;  %2428 = vrcp.f32 %v1291_v16 }
 0x6a6   : > { %v2427_v19 = vpop.eup %2426 }
 0x6a7   : > { %v2429_v20 = vpop.eup %2428 }
 0x6a8   : > { %v1321_v26 = vmul.f32 %v2429_v20, %v3316_v44 }
 0x6bc   : > { %1311 = vadd.xlane.f32.xlu1 %v1310_v15 }
 0x6cd   : > { %1474 = vrot.lane.b32.xlu1 %v3273_v30, %s2789_s18  ;;  %v1322_v30 = vmul.f32 %v2427_v19, %v3320_v46  ;;  %s3553_s18 = sld [smem:[#allocation35_spill]] }
 0x6cf   : > { %v1329_v32 = vpack.c.bf16 %v1322_v30, %v1321_v26 }
 0x708   : > { %v1297_v18 = vpop.xlane.xlu0 %1296 }
 0x709   : > { %2430 = vrcp.f32 %v1297_v18 }
 0x70c   : > { %v1300_v25 = vpop.xlane.xlu1 %1299 }
 0x70d   : > { %2432 = vrcp.f32 %v1300_v25 }
 0x710   : > { %v1303_v14 = vpop.xlane.xlu0 %1302  ;;  %v1306_v29 = vpop.xlane.xlu1 %1305 }
 0x711   : > { %2434 = vrcp.f32 %v1303_v14 }
 0x712   : > { %2436 = vrcp.f32 %v1306_v29 }
 0x713   : > { %v2431_v23 = vpop.eup %2430 }
 0x714   : > { %v1309_v21 = vpop.xlane.xlu0 %1308  ;;  %v1381_v22 = vpop.permute.xlu1 %1380  ;;  %v1323_v27 = vmul.f32 %v2431_v23, %v2415_v62 }
 0x715   : > { %2166 = vmatpush3.bf16.msra.mxu1 %v1381_v22  ;;  %2438 = vrcp.f32 %v1309_v21  ;;  %v2058_v21 = vld [vmem:[#allocation12] ss:$0 sm:$0xff] }
 0x716   : > { %2177 = vmatprep.subr.bf16.mxu1 %v2782_v1 }
 0x717   : > { %v2433_v24 = vpop.eup %2432 }
 0x718   : > { %v1324_v28 = vmul.f32 %v2433_v24, %v2417_v4  ;;  %v1334_v31 = vpop.permute.xlu0 %1333  ;;  %v1428_v38 = vpop.permute.xlu1 %1427 }
 0x719   : > { %2160 = vmatpush3.bf16.msra.mxu0 %v1334_v31 }
 0x71a   : > { %v1330_v35 = vpack.c.bf16 %v1324_v28, %v1323_v27  ;;  %2171 = vmatprep.subr.bf16.mxu0 %v2782_v1 }
 0x71b   : > { %v2435_v36 = vpop.eup %2434 }
 0x71c   : > { %v2437_v37 = vpop.eup %2436  ;;  %2162 = vmatmul.mubr.msk.bf16.vlgmr.msra.gmra.mrb[4].mxu0 %vm1240_vm9, %v1329_v32  ;;  %2168 = vmatmul.mubr.msk.bf16.vlgmr.msra.gmra.mrb[20].mxu1 %vm1240_vm9, %v1330_v35  ;;  %v1325_v39 = vmul.f32 %v2435_v36, %v2421_v8 }
 0x71d   : > { %2172 = vmatpush3.bf16.msra.mxu0 %v1428_v38  ;;  %2173 = vmatprep.mubr.msk.bf16.mxu0 %vm2783_vm5, %v2782_v1  ;;  %v1326_v40 = vmul.f32 %v2437_v37, %v2419_v7 }
 0x71e   : > { %2179 = vmatprep.mubr.msk.bf16.mxu1 %vm2783_vm5, %v2782_v1  ;;  %2183 = vmatprep.subr.bf16.mxu0 %v2782_v1 }
 0x71f   : > { %v1331_v41 = vpack.c.bf16 %v1326_v40, %v1325_v39  ;;  %v2439_v44 = vpop.eup %2438 }
 0x720   : > { %v1327_v46 = vmul.f32 %v2439_v44, %v3328_v3  ;;  %v2396_v44 = vld [vmem:[%s3552_s26] sm:$0xff]  }
 0x724   : > { %2174 = vmatmul.mubr.msk.bf16.vlgmr.msra.gmra.mrb[8].mxu0 %vm1240_vm9, %v1331_v41 }
 0x725   : > { %2187 = vmatprep.mubr.msk.bf16.mxu0 %vm2783_vm5, %v2782_v1  ;;  %2184 = vmatpush3.bf16.msra.mxu0 %v2394_v55 }
 0x726   : > { %2185 = vmatprep.subr.bf16.mxu0 %v2782_v1 }
 0x729   : > { %2186 = vmatpush3.bf16.msra.mxu0 %v2395_v0  ;;  %v2399_v0 = vld [vmem:[%s3553_s18 + $0x8] sm:$0xff]  }
 0x72a   : > { %2199 = vmatprep.subr.bf16.mxu0 %v2782_v1 }
 0x749   : > { %v1312_v42 = vpop.xlane.xlu1 %1311 }
 0x74a   : > { %2440 = vrcp.f32 %v1312_v42 }
 0x74d   : > { %v1475_v43 = vpop.permute.xlu1 %1474 }
 0x74e   : > { %2178 = vmatpush3.bf16.msra.mxu1 %v1475_v43 }
 0x74f   : > { %2191 = vmatprep.subr.bf16.mxu1 %v2782_v1 }
 0x754   : > { %v2441_v45 = vpop.eup %2440 }
 0x755   : > { %v1328_v47 = vmul.f32 %v2441_v45, %v2425_v13  ;;  %v2397_v45 = vld [vmem:[%s3552_s26 + $0x8] sm:$0xff]  }
 0x757   : > { %v1332_v48 = vpack.c.bf16 %v1328_v47, %v1327_v46 }
 0x759   : > { %2180 = vmatmul.mubr.msk.bf16.vlgmr.msra.gmra.mrb[24].mxu1 %vm1240_vm9, %v1332_v48 }
 0x75a   : > { %2195 = vmatprep.mubr.msk.bf16.mxu1 %vm2783_vm5, %v2782_v1  ;;  %2192 = vmatpush3.bf16.msra.mxu1 %v2396_v44 }
 0x75b   : > { %2193 = vmatprep.subr.bf16.mxu1 %v2782_v1 }
 0x75e   : > { %2194 = vmatpush3.bf16.msra.mxu1 %v2397_v45 }
 0x7ef   : > { %v1373_v49 = vpop.f32.mrb[4].mxu0  ;;  %v1420_v50 = vpop.f32.mrb[20].mxu1 }
 0x7f0   : > { %v2163_v51 = vpop.f32.mrb[5].mxu0  ;;  %v2169_v52 = vpop.f32.mrb[21].mxu1 }
 0x7f1   : > { %v1376_v53 = vpop.f32.mrb[6].mxu0  ;;  %v1423_v54 = vpop.f32.mrb[22].mxu1 }
 0x7f2   : > { %v2377_v56 = vpack.i.bf16 %v1423_v54, %v1420_v50  ;;  %v2164_v57 = vpop.f32.mrb[7].mxu0  ;;  %v2170_v58 = vpop.f32.mrb[23].mxu1  ;;  %v2062_v54 = vld [vmem:[#allocation14] ss:$0 sm:$0xff] }
 0x7f3   : > { %v2063_v58 = vld [vmem:[#allocation15] ss:$0 sm:$0xff] }
 0x7f4   : > { %2378 = vrot.lane.b32.xlu0 %v2377_v56, %s2790_s10 }
 0x7f7   : > { %v1467_v59 = vpop.f32.mrb[8].mxu0 }
 0x7f8   : > { %v2175_v60 = vpop.f32.mrb[9].mxu0 }
 0x7f9   : > { %v1470_v61 = vpop.f32.mrb[10].mxu0 }
 0x7fa   : > { %v2382_v62 = vpack.i.bf16 %v1470_v61, %v1467_v59  ;;  %v2176_v63 = vpop.f32.mrb[11].mxu0 }
 0x7fb   : > { %v2398_v63 = vld [vmem:[%s3553_s18] sm:$0xff]  }
 0x7fc   : > { %2383 = vrot.lane.b32.xlu1 %v2382_v62, %s2791_s21  ;;  %s3439_s21 = scalar_lea.hbm %s3556_s11, %s2084_s30 }
 0x82c   : > { %v1514_v4 = vpop.f32.mrb[24].mxu1 }
 0x82d   : > { %v2181_v6 = vpop.f32.mrb[25].mxu1 }
 0x82e   : > { %v1517_v7 = vpop.f32.mrb[26].mxu1  ;;  %v2401_v6 = vld [vmem:[%s3553_s18 + $0x18] sm:$0xff]  }
 0x82f   : > { %v2387_v8 = vpack.i.bf16 %v1517_v7, %v1514_v4  ;;  %v2182_v2 = vpop.f32.mrb[27].mxu1  ;;  %v2400_v4 = vld [vmem:[%s3553_s18 + $0x10] sm:$0xff]   ;;  %v2402_v7 = vld [vmem:[%s3553_s18 + $0x20] sm:$0xff]  }
 0x830   : > { %v2404_v2 = vld [vmem:[%s3553_s18 + $0x30] sm:$0xff]  }
 0x831   : > { %2388 = vrot.lane.b32.xlu0 %v2387_v8, %s2792_s3  ;;  %v2403_v8 = vld [vmem:[%s3553_s18 + $0x28] sm:$0xff]  }
 0x866   : > { %v2379_v9 = vpop.permute.xlu0 %2378 }
 0x867   : > { %v2381_v5 = vunpack.i.h.bf16 %v2379_v9  ;;  %v2380_v10 = vunpack.i.l.bf16 %v2379_v9  ;;  %v2405_v9 = vld [vmem:[%s3553_s18 + $0x38] sm:$0xff]  }
 0x869   : > { %v1546_v15 = vsel %vm1042_vm6, %v1376_v53, %v2381_v5  ;;  %v1545_v16 = vsel %vm1042_vm6, %v1373_v49, %v2380_v10 }
 0x86e   : > { %v2384_v3 = vpop.permute.xlu1 %2383 }
 0x86f   : > { %v2386_v11 = vunpack.i.h.bf16 %v2384_v3  ;;  %v2385_v12 = vunpack.i.l.bf16 %v2384_v3  ;;  %v2064_v3 = vld [vmem:[%s3554_s14] ss:$0 sm:$0xff]  ;;  %s2686_s14 = sshll.u32 %s2793_s17, 4  ;;  %s2687_s14 = int_to_ptr.vmem [resolvable:$false] %s2686_s14 }
 0x870   : > { %s2688_s3 = scalar_lea.vmem %s2687_s14, 512  ;;  %p2689_p4 = scmp.lt.s32.totalorder %s3443_s24, %s2687_s14 }
 0x871   : > { %v1547_v25 = vsel %vm1240_vm9, %v1545_v16, %v2385_v12  ;;  %v1548_v14 = vsel %vm1240_vm9, %v1546_v15, %v2386_v11  ;;  %p2690_p6 = scmp.lt.s32.totalorder %s2688_s3, %s2682_s1 }
 0x873   : > { %p2691_p9 = por %p2690_p6, %p2689_p4 }
 0x875   : > { %p2692_p1 = pnand %p2691_p9, %p2685_p8 }
 0x8a3   : > { %v2389_v13 = vpop.permute.xlu0 %2388 }
 0x8a4   : > { %v2391_v17 = vunpack.i.h.bf16 %v2389_v13  ;;  %v2390_v18 = vunpack.i.l.bf16 %v2389_v13 }
 0x8a6   : > { %v1551_v29 = vsel %vm1549_vm10, %v1548_v14, %v2391_v17  ;;  %v1550_v19 = vsel %vm1549_vm10, %v1547_v25, %v2390_v18 }
 0x8a7   : > { %v1552_v20 = vpack.c.bf16 %v1551_v29, %v1550_v19 }
 0x8a9   : > { %2188 = vmatmul.mubr.msk.bf16.vlgmr.msra.gmra.mrb[12].mxu0 %vm871_vm4, %v1552_v20 }
 0x8aa   : > { %2215 = vmatprep.mubr.msk.bf16.mxu0 %vm2783_vm5, %v2782_v1  ;;  %2200 = vmatpush3.bf16.msra.mxu0 %v2398_v63 }
 0x8ab   : > { %2201 = vmatprep.subr.bf16.mxu0 %v2782_v1 }
 0x8ae   : > { %2202 = vmatpush3.bf16.msra.mxu0 %v2399_v0 }
 0x8af   : > { %2203 = vmatprep.subr.bf16.mxu0 %v2782_v1 }
 0x8b2   : > { %2204 = vmatpush3.bf16.msra.mxu0 %v2400_v4 }
 0x8b3   : > { %2205 = vmatprep.subr.bf16.mxu0 %v2782_v1 }
 0x8b6   : > { %2206 = vmatpush3.bf16.msra.mxu0 %v2401_v6 }
 0x8b7   : > { %2207 = vmatprep.subr.bf16.mxu0 %v2782_v1 }
 0x8ba   : > { %2208 = vmatpush3.bf16.msra.mxu0 %v2402_v7 }
 0x8bb   : > { %2209 = vmatprep.subr.bf16.mxu0 %v2782_v1 }
 0x8be   : > { %2210 = vmatpush3.bf16.msra.mxu0 %v2403_v8 }
 0x8bf   : > { %2211 = vmatprep.subr.bf16.mxu0 %v2782_v1 }
 0x8c2   : > { %2212 = vmatpush3.bf16.msra.mxu0 %v2404_v2 }
 0x8c3   : > { %2213 = vmatprep.subr.bf16.mxu0 %v2782_v1 }
 0x8c6   : > { %2214 = vmatpush3.bf16.msra.mxu0 %v2405_v9 }
 0x97c   : > { %v1608_v22 = vpop.f32.mrb[12].mxu0 }
 0x97d   : > { %v1609_v23 = vadd.f32 %v2058_v21, %v1608_v22  ;;  %v2189_v30 = vpop.f32.mrb[13].mxu0 }
 0x97e   : > { %v1611_v24 = vpop.f32.mrb[14].mxu0 }
 0x97f   : > { %v3374_v26 = vadd.f32 %v1609_v23, %v3240_v33  ;;  %v1612_v27 = vadd.f32 %v2058_v21, %v1611_v24  ;;  %v2190_v28 = vpop.f32.mrb[15].mxu0  ;;  %v2068_v24 = vld [vmem:[%s3555_s15] ss:$0 sm:$0xff] }
 0x981   : > { %v3377_v31 = vadd.f32 %v1612_v27, %v3242_v34  ;;  %v1617_v32 = vsel %vm871_vm4, %v3374_v26, 0.0 }
 0x982   : > { %1618 = vadd.xlane.f32.xlu1 %v1617_v32 }
 0x983   : > { %v1620_v35 = vsel %vm871_vm4, %v3377_v31, 0.0 }
 0x984   : > { %1621 = vadd.xlane.f32.xlu0 %v1620_v35 }
 0xa0f   : > { %v1619_v36 = vpop.xlane.xlu1 %1618 }
 0xa10   : > { %v1623_v37 = vmul.f32 0.03125, %v1619_v36 }
 0xa11   : > { %v1622_v38 = vpop.xlane.xlu0 %1621 }
 0xa12   : > { %v1625_v39 = vsub.f32 %v3374_v26, %v1623_v37  ;;  %v1624_v33 = vmul.f32 0.03125, %v1622_v38 }
 0xa14   : > { %v1626_v40 = vsub.f32 %v3377_v31, %v1624_v33  ;;  %v1627_v41 = vmul.f32 %v1625_v39, %v1625_v39 }
 0xa16   : > { %v1629_v34 = vsel %vm871_vm4, %v1627_v41, 0.0  ;;  %v1628_v42 = vmul.f32 %v1626_v40, %v1626_v40 }
 0xa17   : > { %1630 = vadd.xlane.f32.xlu0 %v1629_v34 }
 0xa18   : > { %v1632_v43 = vsel %vm871_vm4, %v1628_v42, 0.0 }
 0xa1b   : > { %1633 = vadd.xlane.f32.xlu0 %v1632_v43 }
 0xaa4   : > { %v1631_v46 = vpop.xlane.xlu0 %1630 }
 0xaa5   : > { %v1635_v47 = vmul.f32 0.03125, %v1631_v46 }
 0xaa7   : > { %v1637_v48 = vadd.f32 1e-05, %v1635_v47 }
 0xaa8   : > { %v1634_v49 = vpop.xlane.xlu0 %1633 }
 0xaa9   : > { %2442 = vrsqrt.f32 %v1637_v48  ;;  %v1636_v50 = vmul.f32 0.03125, %v1634_v49 }
 0xaab   : > { %v1638_v51 = vadd.f32 1e-05, %v1636_v50 }
 0xaad   : > { %2444 = vrsqrt.f32 %v1638_v51 }
 0xab3   : > { %v2443_v52 = vpop.eup %2442 }
 0xab4   : > { %v1641_v53 = vmul.f32 %v2443_v52, %v1625_v39 }
 0xab6   : > { %v1649_v56 = vmul.f32 %v2062_v54, %v1641_v53 }
 0xab7   : > { %v2445_v55 = vpop.eup %2444 }
 0xab8   : > { %v1642_v57 = vmul.f32 %v2445_v55, %v1626_v40  ;;  %v1657_v60 = vadd.f32 %v2063_v58, %v1649_v56 }
 0xaba   : > { %v1650_v59 = vmul.f32 %v2062_v54, %v1642_v57 }
 0xabc   : > { %v1658_v61 = vadd.f32 %v2063_v58, %v1650_v59 }
 0xabe   : > { %v1659_v62 = vpack.c.bf16 %v1658_v61, %v1657_v60 }
 0xac0   : > { %2196 = vmatmul.mubr.msk.bf16.vlgmr.msra.gmra.mrb[28].mxu1 %vm871_vm4, %v1659_v62 }
 0xb93   : > { %v1715_v5 = vpop.f32.mrb[28].mxu1 }
 0xb94   : > { %v1716_v10 = vadd.f32 %v2064_v3, %v1715_v5  ;;  %v2197_v11 = vpop.f32.mrb[29].mxu1 }
 0xb95   : > { %v1718_v12 = vpop.f32.mrb[30].mxu1 }
 0xb96   : > { %v1722_v13 = vmul.f32 -1.702, %v1716_v10  ;;  %v1719_v15 = vadd.f32 %v2064_v3, %v1718_v12  ;;  %v2198_v16 = vpop.f32.mrb[31].mxu1 }
 0xb98   : > { %v1724_v17 = vmul.f32 1.442695, %v1722_v13  ;;  %v1723_v18 = vmul.f32 -1.702, %v1719_v15 }
 0xb9a   : > { %2446 = vpow2.f32 %v1724_v17  ;;  %v1726_v1 = vmul.f32 1.442695, %v1723_v18 }
 0xb9c   : > { %2448 = vpow2.f32 %v1726_v1 }
 0xba4   : > { %v2447_v25 = vpop.eup %2446 }
 0xba5   : > { %v1728_v14 = vadd.f32 1.0, %v2447_v25 }
 0xba6   : > { %v2449_v29 = vpop.eup %2448 }
 0xba7   : > { %2450 = vrcp.f32 %v1728_v14  ;;  %v1729_v19 = vadd.f32 1.0, %v2449_v29 }
 0xba9   : > { %2452 = vrcp.f32 %v1729_v19 }
 0xbb1   : > { %v2451_v20 = vpop.eup %2450 }
 0xbb2   : > { %v1732_v22 = vmul.f32 %v2451_v20, %v1716_v10 }
 0xbb3   : > { %v2453_v21 = vpop.eup %2452 }
 0xbb4   : > { %v1733_v23 = vmul.f32 %v2453_v21, %v1719_v15 }
 0xbb6   : > { %v1734_v30 = vpack.c.bf16 %v1733_v23, %v1732_v22 }
 0xbb8   : > { %2216 = vmatmul.mubr.bf16.vlgmr.msra.gmra.mrb[16].mxu0 %v1734_v30 }
 0xc8b   : > { %v1823_v27 = vpop.f32.mrb[16].mxu0 }
 0xc8c   : > { %v1824_v28 = vadd.f32 %v2068_v24, %v1823_v27  ;;  %v2217_v32 = vpop.f32.mrb[17].mxu0 }
 0xc8d   : > { %v1826_v35 = vpop.f32.mrb[18].mxu0 }
 0xc8e   : > { %v1830_v36 = vadd.f32 %v1824_v28, %v3374_v26  ;;  %v1827_v37 = vadd.f32 %v2068_v24, %v1826_v35  ;;  %v2218_v38 = vpop.f32.mrb[19].mxu0 }
 0xc90   : > { %1832 = vst.msk [vmem:[%s696_s20] sm:$0xff] %vm871_vm4, %v1830_v36  ;;  %v1831_v39 = vadd.f32 %v1827_v37, %v3377_v31 }
 0xc92   : > { %1833 = vst.msk [vmem:[%s696_s20 + $0x8] sm:$0xff] %vm871_vm4, %v1831_v39 }
 0xc93   : > { %2695 = shalt.err (!%p2692_p1)
}
 0xc94   : > { %s2696_s25 = scalar_lea.hbm %s3439_s21, 256  ;;  %s2700_s20 = scalar_lea.hbm %s3556_s11, 1024 }
 0xc95   : > { %p2697_p5 = scmp.ne.s32.totalorder %s3439_s21, %s2696_s25  ;;  %p2701_p0 = scmp.lt.u32.totalorder %s3439_s21, %s3556_s11 }
 0xc96   : > { %p2702_p10 = scmp.lt.u32.totalorder %s2700_s20, %s2696_s25  ;;  %p2704_p12 = scmp.lt.u32.totalorder %s2696_s25, %s3439_s21 }
 0xc97   : > { %p2698_p3 = pnand %p2697_p5, %p3557_p7 }
 0xc98   : > { %p2703_p11 = por %p2702_p10, %p2701_p0 }
 0xc99   : > { %p2699_p13 = pneg %p2698_p3 }
 0xc9a   : > { %p2705_p2 = por %p2704_p12, %p2703_p11 }
 0xc9c   : > { %p2706_p8 = pnand %p2705_p2, %p2699_p13 }
 0xc9e   : > { %2709 = shalt.err (!%p2706_p8)
}
 0xc9f   : > { %s2794_s1 = smov 128  }
 0xca0   : > { %2247 = dma.vmem_to_hbm [thread:$0]  (%p3557_p7), %s3443_s24, 256, %s3439_s21, %s1835_s19, %s2794_s1, %s2794_s1, %s2790_s10  }
 0xca1 PF: > { %p2292_p4 = scmp.ge.s32.totalorder %s2768_s0, 2  ;;  %s1863_s17 = sand.u32 1, %s2756_s27  }
 0xca2   : > { %p3558_p6 = scmp.ne.s32.totalorder %s3538_s6, 0  ;;  %s1864_s14 = scalar_lea.sflag [#allocation5], %s1863_s17 }
 0xca4   : > { %p2276_p9 = pnand %p2292_p4, %p3558_p6 }
 0xca6   : > { %2751 = dma.done.wait (!%p2276_p9), %s1864_s14, 256  }
 0xca7   : > { %2753 = vsyncadd (!%p2276_p9), %s1864_s14, 4294967040  ;;  %p37_p1 = scmp.ge.s32.totalorder %s3057_s22, 6   ;;  %s3559_s27 = smov %s2760_s28 }
 0xca8   : > { %s3560_s28 = smov %s2764_s29  ;;  %s3561_s29 = smov %s3068_s16 }
 0xca9   : > { %s3562_s0 = smov %s3057_s22  ;;  %39 = sbr.rel (!%p37_p1) target bundleno = 25 (0x19), region = 173 }
 0xcb0   :  { %1869 = vsyncpa [#allocation4], 1 }
 0xcb1   :  { %1871 = vsyncpa [#allocation4 + $0x1], 1 }
 0xcb2   :  { %1872 = vsyncpa [#allocation7], 1 }
 0xcb3   :  { %1874 = vsyncpa [#allocation7 + $0x1], 1 }
 0xcb4   :  { %1875 = vsyncpa [#allocation10], 1 }
 0xcb5   :  { %1876 = vsyncpa [#allocation13], 1 }
 0xcb6   :  { %1877 = vsyncpa [#allocation16], 1 }
 0xcb7   :  { %1878 = vsyncpa [#allocation5], 1 }
 0xcb8   :  { %1880 = vsyncpa [#allocation5 + $0x1], 1 }

</bundles_post_ra>
